<compile_context>
chip_gen: v7x
topology: tpu7x:2x2x1
jax: 0.10.0
libtpu: 0.0.40
codegen_flags: <defaults>
</compile_context>

<pallas_src>
import functools
import math

import jax
import jax.numpy as jnp
from jax.experimental import pallas as pl
from jax.experimental.pallas import tpu as pltpu

LANE = 128


def _round_up(n, m):
    return ((n + m - 1) // m) * m


def _gelu_tanh(x):
    # TODO(synk): EncoderBlock source not provided; pre-LN layout + tanh-approx
    # GELU assumed (PyTorch nn.GELU default is the erf form -> tiny drift).
    # Dropout is treated as identity (eval semantics).
    c = math.sqrt(2.0 / math.pi)
    return 0.5 * x * (1.0 + jnp.tanh(c * (x + 0.044715 * x * x * x)))


# ----------------------------------------------------------------------------
# Fused Pallas kernel: projection + streamed encoder blocks + SimMIM head
# grid = (batch_row_tiles [parallel], num_blocks [arbitrary])
# ----------------------------------------------------------------------------
def _simmim_fused_kernel(nb, spt, L, num_heads, head_dim, D, eps,
                         patches_ref, addin_ref, projw_ref,
                         headw_ref, headb_ref,
                         wqkv_ref, wo_ref, w1_ref, w2_ref,
                         dvec_ref, bqkv_ref, b1_ref,
                         out_ref, x_ref):
    f32 = jnp.float32
    bf16 = jnp.bfloat16
    blk = pl.program_id(1)
    D_pad = addin_ref.shape[-1]
    Nt = spt * L

    # ---- block 0: patch projection (keep & proj bias folded host-side) +
    #      mask-token substitution + positional embedding ----
    @pl.when(blk == 0)
    def _():
        x_ref[...] = (jnp.dot(patches_ref[...], projw_ref[...],
                              preferred_element_type=f32) + addin_ref[...])

    # constants (cheap, recomputed per step)
    lane = jax.lax.broadcasted_iota(jnp.int32, (1, D_pad), 1)
    dmask = (lane < D).astype(f32)                    # logical lanes
    inv_d = 1.0 / D
    scale = 1.0 / math.sqrt(head_dim)

    def layer_norm(t, g, b):
        mu = jnp.sum(t, axis=-1, keepdims=True) * inv_d
        diff = (t - mu) * dmask                       # padded lanes stay zero
        var = jnp.sum(diff * diff, axis=-1, keepdims=True) * inv_d
        return diff * jax.lax.rsqrt(var + eps) * g + b

    # per-block parameters (leading block dim of size 1, streamed by BlockSpec)
    dv = dvec_ref[0]                                  # (8, D_pad)      f32
    ln1_g, ln1_b, bo = dv[0:1], dv[1:2], dv[2:3]
    ln2_g, ln2_b, b2 = dv[3:4], dv[4:5], dv[5:6]
    bqkv = bqkv_ref[0]                                # (1, 3*D_pad)    f32
    b1 = b1_ref[0]                                    # (1, M_pad)      f32
    wqkv = wqkv_ref[0]                                # (D_pad, 3*D_pad) bf16
    wo = wo_ref[0]                                    # (D, D_pad)       bf16
    w1 = w1_ref[0]                                    # (D_pad, M_pad)   bf16
    w2 = w2_ref[0]                                    # (M_pad, D_pad)   bf16

    x = x_ref[...]                                    # (Nt, D_pad) f32 residual

    # ---- multi-head self-attention (fused QKV, head-batched contraction) ----
    xn = layer_norm(x, ln1_g, ln1_b)
    qkv = jnp.dot(xn.astype(bf16), wqkv, preferred_element_type=f32) + bqkv
    q = qkv[:, 0:D_pad].reshape(spt, L, D_pad)        # 128-aligned lane cuts
    k = qkv[:, D_pad:2 * D_pad].reshape(spt, L, D_pad)
    v = qkv[:, 2 * D_pad:3 * D_pad].reshape(spt, L, D_pad)

    def split_heads(t):                               # -> (spt*H, L, head_dim) bf16
        return jnp.stack(
            [t[:, :, h * head_dim:(h + 1) * head_dim] for h in range(num_heads)],
            axis=1).reshape(spt * num_heads, L, head_dim).astype(bf16)

    qh, kh, vh = split_heads(q), split_heads(k), split_heads(v)
    s = jnp.einsum('znd,zmd->znm', qh, kh,
                   preferred_element_type=f32) * scale           # (spt*H, L, L)
    s = s - jnp.max(s, axis=-1, keepdims=True)
    p = jnp.exp(s)
    p = p * pl.reciprocal(jnp.sum(p, axis=-1, keepdims=True), approx=True)
    oh = jnp.einsum('znm,zmd->znd', p.astype(bf16), vh,
                    preferred_element_type=f32)                  # (spt*H, L, hd)
    oh = oh.reshape(spt, num_heads, L, head_dim)
    attn = jnp.concatenate([oh[:, h] for h in range(num_heads)],
                           axis=-1).reshape(Nt, num_heads * head_dim)
    attn = jnp.dot(attn.astype(bf16), wo, preferred_element_type=f32) + bo
    x = x + attn                                      # residual 1

    # ---- MLP ----
    xn2 = layer_norm(x, ln2_g, ln2_b)
    h1 = jnp.dot(xn2.astype(bf16), w1, preferred_element_type=f32) + b1
    h1 = _gelu_tanh(h1)
    h2 = jnp.dot(h1.astype(bf16), w2, preferred_element_type=f32) + b2
    x = x + h2                                        # residual 2
    x_ref[...] = x                                    # carry to next block step

    # ---- last block: SimMIM head on every token (masked gather is host-side)
    @pl.when(blk == nb - 1)
    def _():
        pred = (jnp.dot(x.astype(bf16), headw_ref[...],
                        preferred_element_type=f32) + headb_ref[...])
        out_ref[...] = pred.astype(out_ref.dtype)     # lane-dense store


# ----------------------------------------------------------------------------
# Plain-JAX glue: patchify (nn.Unfold), masking, gathers
# ----------------------------------------------------------------------------
def extract_patches(x, p):
    """nn.Unfold(kernel=(p,p), stride=p) + permute(0,2,1) -> (B, L, C*p*p)."""
    B, C, H, W = x.shape
    x = x.reshape(B, C, H // p, p, W // p, p)
    x = jnp.transpose(x, (0, 2, 4, 1, 3, 5))          # (B, Hp, Wp, C, p, p)
    return x.reshape(B, (H // p) * (W // p), C * p * p)


def simple_masking(patches, mask_ratio, key):
    # TODO(synk): simple_masking() source not provided; standard SimMIM
    # convention: exactly int(L * mask_ratio) patches masked per sample
    # (static count so JAX shapes stay static); targets = original pixels of
    # masked patches.
    B, L, P = patches.shape
    k = int(L * mask_ratio)
    idx = jnp.stack([
        jnp.sort(jax.random.permutation(jax.random.fold_in(key, b), L)[:k])
        for b in range(B)])                           # (B, k)
    bool_mask = jnp.zeros((B, L), bool).at[
        jnp.arange(B)[:, None], idx].set(True)
    flat_idx = (jnp.arange(B)[:, None] * L + idx).reshape(-1)   # (B*k,)
    targets = patches.reshape(B * L, P)[flat_idx]               # (B*k, C*p*p)
    return patches, bool_mask, targets, flat_idx


# ----------------------------------------------------------------------------
# Parameters: natural init + lane-padded / packed (bf16) form for the kernel
# ----------------------------------------------------------------------------
def init_params(key, C, H, W, patch_size, embed_dim, num_heads, mlp_dim,
                num_blocks):
    Ppix = C * patch_size * patch_size
    L = (H // patch_size) * (W // patch_size)
    ks = jax.random.split(key, 4 + num_blocks)

    def dense(k, fan_in, fan_out):
        return 0.02 * jax.random.normal(k, (fan_in, fan_out), jnp.float32)

    params = {
        "proj_w": dense(ks[0], Ppix, embed_dim),
        "proj_b": jnp.zeros((embed_dim,), jnp.float32),
        "head_w": dense(ks[1], embed_dim, Ppix),
        "head_b": jnp.zeros((Ppix,), jnp.float32),
        "mask_token": jax.random.normal(ks[2], (1, 1, embed_dim), jnp.float32),
        "pos_emb": jax.random.uniform(ks[3], (1, L, embed_dim), jnp.float32),
        "blocks": [],
    }
    D = embed_dim
    for i in range(num_blocks):
        bk = jax.random.split(ks[4 + i], 6)
        params["blocks"].append({
            "ln1_g": jnp.ones((1, D), jnp.float32),
            "ln1_b": jnp.zeros((1, D), jnp.float32),
            "wq": dense(bk[0], D, D), "bq": jnp.zeros((1, D), jnp.float32),
            "wk": dense(bk[1], D, D), "bk": jnp.zeros((1, D), jnp.float32),
            "wv": dense(bk[2], D, D), "bv": jnp.zeros((1, D), jnp.float32),
            "wo": dense(bk[3], D, D), "bo": jnp.zeros((1, D), jnp.float32),
            "ln2_g": jnp.ones((1, D), jnp.float32),
            "ln2_b": jnp.zeros((1, D), jnp.float32),
            "w1": dense(bk[4], D, mlp_dim),
            "b1": jnp.zeros((1, mlp_dim), jnp.float32),
            "w2": dense(bk[5], mlp_dim, D),
            "b2": jnp.zeros((1, D), jnp.float32),
        })
    return params


def pack_params(params, num_heads):
    """Zero-pad to 128 lanes, cast matmul weights to bf16, stack per block."""
    D = params["proj_w"].shape[1]
    Ppix = params["proj_w"].shape[0]
    M = params["blocks"][0]["w1"].shape[1]
    nb = len(params["blocks"])
    L = params["pos_emb"].shape[1]
    D_pad = _round_up(D, LANE)
    P_pad = _round_up(Ppix, LANE)
    M_pad = _round_up(M, LANE)
    bf16 = jnp.bfloat16

    def pad2(w, r, c):
        return jnp.pad(w, ((0, r - w.shape[0]), (0, c - w.shape[1])))

    def padv(v, c):
        v = v.reshape(-1)
        return jnp.pad(v, (0, c - v.shape[0]))

    wqkv, wo, w1, w2, dvecs, bqkv, b1 = [], [], [], [], [], [], []
    for blk in params["blocks"]:
        wqkv.append(jnp.concatenate([pad2(blk["wq"], D_pad, D_pad),
                                     pad2(blk["wk"], D_pad, D_pad),
                                     pad2(blk["wv"], D_pad, D_pad)],
                                    axis=1).astype(bf16))
        # wo keeps its contraction dim at D (= num_heads*head_dim): the
        # head-concat output is only D lanes wide, so no padded-lane MACs.
        wo.append(pad2(blk["wo"], D, D_pad).astype(bf16))
        w1.append(pad2(blk["w1"], D_pad, M_pad).astype(bf16))
        w2.append(pad2(blk["w2"], M_pad, D_pad).astype(bf16))
        dvecs.append(jnp.stack([
            padv(blk["ln1_g"], D_pad), padv(blk["ln1_b"], D_pad),
            padv(blk["bo"], D_pad),
            padv(blk["ln2_g"], D_pad), padv(blk["ln2_b"], D_pad),
            padv(blk["b2"], D_pad),
            jnp.zeros((D_pad,), jnp.float32), jnp.zeros((D_pad,), jnp.float32)]))
        bqkv.append(jnp.concatenate([padv(blk["bq"], D_pad),
                                     padv(blk["bk"], D_pad),
                                     padv(blk["bv"], D_pad)]).reshape(1, 3 * D_pad))
        b1.append(padv(blk["b1"], M_pad).reshape(1, M_pad))

    return {
        "proj_w": pad2(params["proj_w"], P_pad, D_pad).astype(bf16),
        "proj_b": padv(params["proj_b"], D_pad),            # f32, folded host-side
        "head_w": pad2(params["head_w"], D_pad, P_pad).astype(bf16),
        "head_b": padv(params["head_b"], P_pad).reshape(1, P_pad),
        "mask_token": padv(params["mask_token"], D_pad),    # (D_pad,)
        "pos_emb": pad2(params["pos_emb"][0], L, D_pad),    # (L, D_pad)
        "wqkv": jnp.stack(wqkv), "wo": jnp.stack(wo),
        "w1": jnp.stack(w1), "w2": jnp.stack(w2),
        "dvecs": jnp.stack(dvecs), "bqkv": jnp.stack(bqkv), "b1": jnp.stack(b1),
        "dims": dict(D=D, Ppix=Ppix, M=M, D_pad=D_pad, P_pad=P_pad,
                     M_pad=M_pad, nb=nb, num_heads=num_heads,
                     head_dim=D // num_heads, L=L),
    }


# ----------------------------------------------------------------------------
# Forward
# ----------------------------------------------------------------------------
def simmim_forward(packed, x, mask_key, mask_ratio, patch_size,
                   samples_per_tile=1):
    # samples_per_tile: raise at real shapes so each row tile has 256-512
    # tokens (v6e/v7x MXU sublane fill); must divide the batch.
    dims = packed["dims"]
    B = x.shape[0]
    patches = extract_patches(x, patch_size)                  # (B, L, Ppix)
    patches, bool_mask, targets, flat_idx = simple_masking(
        patches, mask_ratio, mask_key)
    _, L, Ppix = patches.shape
    N = B * L
    D_pad, P_pad, M_pad = dims["D_pad"], dims["P_pad"], dims["M_pad"]
    D, nb = dims["D"], dims["nb"]
    nh, hd = dims["num_heads"], dims["head_dim"]

    spt = samples_per_tile
    assert B % spt == 0
    num_row_tiles = B // spt
    Nt = spt * L

    # keep is folded host-side: keep*(XW+b)+addin == (keep.X)W + keep*b + addin
    keep = (1.0 - bool_mask.astype(jnp.float32))[..., None]   # (B, L, 1)
    patches_pad = jnp.pad(patches, ((0, 0), (0, 0), (0, P_pad - Ppix)))
    patches_eff = (keep * patches_pad).reshape(N, P_pad).astype(jnp.bfloat16)
    addin_eff = (jnp.where(bool_mask[..., None], packed["mask_token"], 0.0)
                 + packed["pos_emb"][None]
                 + keep * packed["proj_b"]).reshape(N, D_pad).astype(jnp.float32)

    kern = functools.partial(_simmim_fused_kernel, nb, spt, L, nh, hd, D, 1e-5)

    flops = (2 * N * P_pad * D_pad
             + nb * (2 * N * D_pad * 3 * D_pad        # fused QKV
                     + 4 * B * nh * L * L * hd        # scores + PV
                     + 2 * N * D * D_pad              # output projection
                     + 4 * N * D_pad * M_pad)         # MLP
             + 2 * N * D_pad * P_pad)
    transcendentals = nb * (N * M_pad + B * nh * L * L)
    bytes_accessed = (
        N * P_pad * 2 + N * D_pad * 4 + N * P_pad * 4
        + (P_pad * D_pad + D_pad * P_pad) * 2 + P_pad * 4
        + nb * (D_pad * 3 * D_pad + D * D_pad + 2 * D_pad * M_pad) * 2
        + nb * (8 * D_pad + 3 * D_pad + M_pad) * 4)

    pred_pad = pl.pallas_call(
        kern,
        out_shape=jax.ShapeDtypeStruct((N, P_pad), jnp.float32),
        grid=(num_row_tiles, nb),
        in_specs=[
            pl.BlockSpec((Nt, P_pad), lambda i, j: (i, 0)),           # patches
            pl.BlockSpec((Nt, D_pad), lambda i, j: (i, 0)),           # addin
            pl.BlockSpec((P_pad, D_pad), lambda i, j: (0, 0)),        # proj_w
            pl.BlockSpec((D_pad, P_pad), lambda i, j: (0, 0)),        # head_w
            pl.BlockSpec((1, P_pad), lambda i, j: (0, 0)),            # head_b
            pl.BlockSpec((1, D_pad, 3 * D_pad), lambda i, j: (j, 0, 0)),  # wqkv
            pl.BlockSpec((1, D, D_pad), lambda i, j: (j, 0, 0)),          # wo
            pl.BlockSpec((1, D_pad, M_pad), lambda i, j: (j, 0, 0)),      # w1
            pl.BlockSpec((1, M_pad, D_pad), lambda i, j: (j, 0, 0)),      # w2
            pl.BlockSpec((1, 8, D_pad), lambda i, j: (j, 0, 0)),          # dvecs
            pl.BlockSpec((1, 1, 3 * D_pad), lambda i, j: (j, 0, 0)),      # bqkv
            pl.BlockSpec((1, 1, M_pad), lambda i, j: (j, 0, 0)),          # b1
        ],
        out_specs=pl.BlockSpec((Nt, P_pad), lambda i, j: (i, 0)),
        scratch_shapes=[pltpu.VMEM((Nt, D_pad), jnp.float32)],        # residual x
        compiler_params=pltpu.CompilerParams(
            dimension_semantics=("parallel", "arbitrary"),
            # explicit scoped-VMEM budget; at real ViT sizes raise with
            # headroom and budget against v7x's 64 MiB physical per core.
            vmem_limit_bytes=32 * 1024 * 1024),
        cost_estimate=pl.CostEstimate(flops=int(flops),
                                      transcendentals=int(transcendentals),
                                      bytes_accessed=int(bytes_accessed)),
    )(patches_eff, addin_eff,
      packed["proj_w"], packed["head_w"], packed["head_b"],
      packed["wqkv"], packed["wo"], packed["w1"], packed["w2"],
      packed["dvecs"], packed["bqkv"], packed["b1"])

    pred_all = pred_pad[:, :Ppix]                              # (N, Ppix)
    predicted_pixels = pred_all[flat_idx]                      # (B*k, Ppix)
    return predicted_pixels, targets


# ----------------------------------------------------------------------------
if __name__ == "__main__":
    key = jax.random.PRNGKey(0)
    B, C, H, W = 2, 4, 16, 16          # input_shape = (C, H, W)
    patch_size = 4                     # L = 16 patches, Ppix = 64
    embed_dim = 64
    num_heads = 4
    mlp_dim = 128
    num_blocks = 2
    mask_ratio = 0.6

    kp, kx, km = jax.random.split(key, 3)
    params = init_params(kp, C, H, W, patch_size, embed_dim, num_heads,
                         mlp_dim, num_blocks)
    packed = pack_params(params, num_heads)
    x = jax.random.normal(kx, (B, C, H, W), jnp.float32)

    pred, targets = simmim_forward(packed, x, km, mask_ratio, patch_size,
                                   samples_per_tile=1)
    jax.block_until_ready((pred, targets))

    L = (H // patch_size) * (W // patch_size)
    k = int(L * mask_ratio)
    assert pred.shape == (B * k, C * patch_size * patch_size)
    assert targets.shape == (B * k, C * patch_size * patch_size)
    assert jnp.all(jnp.isfinite(pred)) and jnp.all(jnp.isfinite(targets))
    print("KERNEL_OK")
</pallas_src>

<mosaic_0001>
module attributes {stable_mosaic.version = 11 : i64} {
  func.func @_simmim_fused_kernel(%arg0: i32, %arg1: i32, %arg2: memref<16x128xbf16, #tpu.memory_space<vmem>>, %arg3: memref<16x128xf32, #tpu.memory_space<vmem>>, %arg4: memref<128x128xbf16, #tpu.memory_space<vmem>>, %arg5: memref<128x128xbf16, #tpu.memory_space<vmem>>, %arg6: memref<1x128xf32, #tpu.memory_space<vmem>>, %arg7: memref<1x128x384xbf16, #tpu.memory_space<vmem>>, %arg8: memref<1x64x128xbf16, #tpu.memory_space<vmem>>, %arg9: memref<1x128x128xbf16, #tpu.memory_space<vmem>>, %arg10: memref<1x128x128xbf16, #tpu.memory_space<vmem>>, %arg11: memref<1x8x128xf32, #tpu.memory_space<vmem>>, %arg12: memref<1x1x384xf32, #tpu.memory_space<vmem>>, %arg13: memref<1x1x128xf32, #tpu.memory_space<vmem>>, %arg14: memref<16x128xf32, #tpu.memory_space<vmem>>, %arg15: memref<16x128xf32, #tpu.memory_space<vmem>>) attributes {dimension_semantics = [#tpu.dimension_semantics<parallel>, #tpu.dimension_semantics<arbitrary>], iteration_bounds = array<i64: 2, 2>, scalar_prefetch = 0 : i64, scratch_operands = 1 : i64, tpu.core_type = #tpu.core_type<tc>, window_params = [{transform_indices = @transform_0, window_bounds = array<i64: 16, 128>}, {transform_indices = @transform_1, window_bounds = array<i64: 16, 128>}, {pipeline_mode = #tpu.pipeline_mode<synchronous>, transform_indices = @transform_2, window_bounds = array<i64: 128, 128>}, {pipeline_mode = #tpu.pipeline_mode<synchronous>, transform_indices = @transform_3, window_bounds = array<i64: 128, 128>}, {pipeline_mode = #tpu.pipeline_mode<synchronous>, transform_indices = @transform_4, window_bounds = array<i64: 1, 128>}, {transform_indices = @transform_5, window_bounds = array<i64: 1, 128, 384>}, {transform_indices = @transform_6, window_bounds = array<i64: 1, 64, 128>}, {transform_indices = @transform_7, window_bounds = array<i64: 1, 128, 128>}, {transform_indices = @transform_8, window_bounds = array<i64: 1, 128, 128>}, {transform_indices = @transform_9, window_bounds = array<i64: 1, 8, 128>}, {transform_indices = @transform_10, window_bounds = array<i64: 1, 1, 384>}, {transform_indices = @transform_11, window_bounds = array<i64: 1, 1, 128>}, {transform_indices = @transform_12, window_bounds = array<i64: 16, 128>}]} {
    %c0_i32 = arith.constant 0 : i32
    %0 = arith.cmpi eq, %arg1, %c0_i32 : i32
    %1 = arith.extui %0 : i1 to i32
    %c0_i32_0 = arith.constant 0 : i32
    %2 = arith.cmpi ne, %1, %c0_i32_0 : i32
    scf.if %2 {
      %c0_48 = arith.constant 0 : index
      %c0_49 = arith.constant 0 : index
      %173 = vector.load %arg2[%c0_48, %c0_49] : memref<16x128xbf16, #tpu.memory_space<vmem>>, vector<16x128xbf16>
      %c0_50 = arith.constant 0 : index
      %c0_51 = arith.constant 0 : index
      %174 = vector.load %arg4[%c0_50, %c0_51] : memref<128x128xbf16, #tpu.memory_space<vmem>>, vector<128x128xbf16>
      %cst_52 = arith.constant dense<0.000000e+00> : vector<16x128xf32>
      %175 = tpu.matmul %173, %174, %cst_52 {dimension_numbers = #tpu.dot_dimension_numbers<[1], [0], [0], [1], [0, 0, 1, 1], [], []>} : vector<16x128xbf16>, vector<128x128xbf16>, vector<16x128xf32> -> vector<16x128xf32>
      %c0_53 = arith.constant 0 : index
      %c0_54 = arith.constant 0 : index
      %176 = vector.load %arg3[%c0_53, %c0_54] : memref<16x128xf32, #tpu.memory_space<vmem>>, vector<16x128xf32>
      %177 = arith.addf %175, %176 : vector<16x128xf32>
      %c0_55 = arith.constant 0 : index
      %c0_56 = arith.constant 0 : index
      %178 = vector.load %arg15[%c0_55, %c0_56] : memref<16x128xf32, #tpu.memory_space<vmem>>, vector<16x128xf32>
      tpu.vector_store %arg15[%c0_55, %c0_56], %177 {strides = array<i32>} : memref<16x128xf32, #tpu.memory_space<vmem>>, vector<16x128xf32>,
    } else {
    }
    %3 = tpu.iota {dimensions = array<i32: 1>} : vector<1x128xi32>
    %c64_i32 = arith.constant 64 : i32
    %4 = vector.broadcast %c64_i32 : i32 to vector<1x128xi32>
    %5 = arith.cmpi slt, %3, %4 : vector<1x128xi32>
    %6 = arith.extui %5 : vector<1x128xi1> to vector<1x128xi32>
    %7 = arith.sitofp %6 : vector<1x128xi32> to vector<1x128xf32>
    %c0 = arith.constant 0 : index
    %c0_1 = arith.constant 0 : index
    %c0_2 = arith.constant 0 : index
    %8 = vector.load %arg11[%c0, %c0_1, %c0_2] : memref<1x8x128xf32, #tpu.memory_space<vmem>>, vector<1x8x128xf32>
    %9 = vector.shape_cast %8 : vector<1x8x128xf32> to vector<8x128xf32>
    %10 = vector.extract_strided_slice %9 {offsets = [0, 0], sizes = [1, 128], strides = [1, 1]} : vector<8x128xf32> to vector<1x128xf32>
    %11 = vector.extract_strided_slice %9 {offsets = [1, 0], sizes = [1, 128], strides = [1, 1]} : vector<8x128xf32> to vector<1x128xf32>
    %12 = vector.extract_strided_slice %9 {offsets = [2, 0], sizes = [1, 128], strides = [1, 1]} : vector<8x128xf32> to vector<1x128xf32>
    %13 = vector.extract_strided_slice %9 {offsets = [3, 0], sizes = [1, 128], strides = [1, 1]} : vector<8x128xf32> to vector<1x128xf32>
    %14 = vector.extract_strided_slice %9 {offsets = [4, 0], sizes = [1, 128], strides = [1, 1]} : vector<8x128xf32> to vector<1x128xf32>
    %15 = vector.extract_strided_slice %9 {offsets = [5, 0], sizes = [1, 128], strides = [1, 1]} : vector<8x128xf32> to vector<1x128xf32>
    %c0_3 = arith.constant 0 : index
    %c0_4 = arith.constant 0 : index
    %c0_5 = arith.constant 0 : index
    %16 = vector.load %arg12[%c0_3, %c0_4, %c0_5] : memref<1x1x384xf32, #tpu.memory_space<vmem>>, vector<1x1x384xf32>
    %17 = vector.shape_cast %16 : vector<1x1x384xf32> to vector<1x384xf32>
    %c0_6 = arith.constant 0 : index
    %c0_7 = arith.constant 0 : index
    %c0_8 = arith.constant 0 : index
    %18 = vector.load %arg13[%c0_6, %c0_7, %c0_8] : memref<1x1x128xf32, #tpu.memory_space<vmem>>, vector<1x1x128xf32>
    %19 = vector.shape_cast %18 : vector<1x1x128xf32> to vector<1x128xf32>
    %c0_9 = arith.constant 0 : index
    %c0_10 = arith.constant 0 : index
    %c0_11 = arith.constant 0 : index
    %20 = vector.load %arg7[%c0_9, %c0_10, %c0_11] : memref<1x128x384xbf16, #tpu.memory_space<vmem>>, vector<1x128x384xbf16>
    %21 = vector.shape_cast %20 : vector<1x128x384xbf16> to vector<128x384xbf16>
    %c0_12 = arith.constant 0 : index
    %c0_13 = arith.constant 0 : index
    %c0_14 = arith.constant 0 : index
    %22 = vector.load %arg8[%c0_12, %c0_13, %c0_14] : memref<1x64x128xbf16, #tpu.memory_space<vmem>>, vector<1x64x128xbf16>
    %23 = vector.shape_cast %22 : vector<1x64x128xbf16> to vector<64x128xbf16>
    %c0_15 = arith.constant 0 : index
    %c0_16 = arith.constant 0 : index
    %c0_17 = arith.constant 0 : index
    %24 = vector.load %arg9[%c0_15, %c0_16, %c0_17] : memref<1x128x128xbf16, #tpu.memory_space<vmem>>, vector<1x128x128xbf16>
    %25 = vector.shape_cast %24 : vector<1x128x128xbf16> to vector<128x128xbf16>
    %c0_18 = arith.constant 0 : index
    %c0_19 = arith.constant 0 : index
    %c0_20 = arith.constant 0 : index
    %26 = vector.load %arg10[%c0_18, %c0_19, %c0_20] : memref<1x128x128xbf16, #tpu.memory_space<vmem>>, vector<1x128x128xbf16>
    %27 = vector.shape_cast %26 : vector<1x128x128xbf16> to vector<128x128xbf16>
    %c0_21 = arith.constant 0 : index
    %c0_22 = arith.constant 0 : index
    %28 = vector.load %arg15[%c0_21, %c0_22] : memref<16x128xf32, #tpu.memory_space<vmem>>, vector<16x128xf32>
    %cst = arith.constant dense<0.000000e+00> : vector<16xf32>
    %29 = vector.multi_reduction <add>, %28, %cst [1] : vector<16x128xf32> to vector<16xf32>
    %30 = vector.shape_cast %29 : vector<16xf32> to vector<16x1xf32>
    %cst_23 = arith.constant 1.562500e-02 : f32
    %31 = vector.broadcast %cst_23 : f32 to vector<16x1xf32>
    %32 = arith.mulf %30, %31 : vector<16x1xf32>
    %33 = vector.broadcast %32 : vector<16x1xf32> to vector<16x128xf32>
    %34 = arith.subf %28, %33 : vector<16x128xf32>
    %35 = vector.broadcast %7 : vector<1x128xf32> to vector<16x128xf32>
    %36 = arith.mulf %34, %35 : vector<16x128xf32>
    %37 = arith.mulf %36, %36 : vector<16x128xf32>
    %cst_24 = arith.constant dense<0.000000e+00> : vector<16xf32>
    %38 = vector.multi_reduction <add>, %37, %cst_24 [1] : vector<16x128xf32> to vector<16xf32>
    %39 = vector.shape_cast %38 : vector<16xf32> to vector<16x1xf32>
    %cst_25 = arith.constant 1.562500e-02 : f32
    %40 = vector.broadcast %cst_25 : f32 to vector<16x1xf32>
    %41 = arith.mulf %39, %40 : vector<16x1xf32>
    %cst_26 = arith.constant 9.99999974E-6 : f32
    %42 = vector.broadcast %cst_26 : f32 to vector<16x1xf32>
    %43 = arith.addf %41, %42 : vector<16x1xf32>
    %44 = math.rsqrt %43 : vector<16x1xf32>
    %45 = vector.broadcast %44 : vector<16x1xf32> to vector<16x128xf32>
    %46 = arith.mulf %36, %45 : vector<16x128xf32>
    %47 = vector.broadcast %10 : vector<1x128xf32> to vector<16x128xf32>
    %48 = arith.mulf %46, %47 : vector<16x128xf32>
    %49 = vector.broadcast %11 : vector<1x128xf32> to vector<16x128xf32>
    %50 = arith.addf %48, %49 : vector<16x128xf32>
    %51 = arith.truncf %50 : vector<16x128xf32> to vector<16x128xbf16>
    %cst_27 = arith.constant dense<0.000000e+00> : vector<16x384xf32>
    %52 = tpu.matmul %51, %21, %cst_27 {dimension_numbers = #tpu.dot_dimension_numbers<[1], [0], [0], [1], [0, 0, 1, 1], [], []>} : vector<16x128xbf16>, vector<128x384xbf16>, vector<16x384xf32> -> vector<16x384xf32>
    %53 = vector.broadcast %17 : vector<1x384xf32> to vector<16x384xf32>
    %54 = arith.addf %52, %53 : vector<16x384xf32>
    %55 = vector.extract_strided_slice %54 {offsets = [0, 0], sizes = [16, 128], strides = [1, 1]} : vector<16x384xf32> to vector<16x128xf32>
    %56 = vector.shape_cast %55 : vector<16x128xf32> to vector<1x16x128xf32>
    %57 = vector.extract_strided_slice %54 {offsets = [0, 128], sizes = [16, 128], strides = [1, 1]} : vector<16x384xf32> to vector<16x128xf32>
    %58 = vector.shape_cast %57 : vector<16x128xf32> to vector<1x16x128xf32>
    %59 = vector.extract_strided_slice %54 {offsets = [0, 256], sizes = [16, 128], strides = [1, 1]} : vector<16x384xf32> to vector<16x128xf32>
    %60 = vector.shape_cast %59 : vector<16x128xf32> to vector<1x16x128xf32>
    %61 = vector.extract_strided_slice %56 {offsets = [0, 0, 0], sizes = [1, 16, 16], strides = [1, 1, 1]} : vector<1x16x128xf32> to vector<1x16x16xf32>
    %62 = vector.extract_strided_slice %56 {offsets = [0, 0, 16], sizes = [1, 16, 16], strides = [1, 1, 1]} : vector<1x16x128xf32> to vector<1x16x16xf32>
    %63 = vector.extract_strided_slice %56 {offsets = [0, 0, 32], sizes = [1, 16, 16], strides = [1, 1, 1]} : vector<1x16x128xf32> to vector<1x16x16xf32>
    %64 = vector.extract_strided_slice %56 {offsets = [0, 0, 48], sizes = [1, 16, 16], strides = [1, 1, 1]} : vector<1x16x128xf32> to vector<1x16x16xf32>
    %65 = vector.shape_cast %61 : vector<1x16x16xf32> to vector<1x1x16x16xf32>
    %66 = vector.shape_cast %62 : vector<1x16x16xf32> to vector<1x1x16x16xf32>
    %67 = vector.shape_cast %63 : vector<1x16x16xf32> to vector<1x1x16x16xf32>
    %68 = vector.shape_cast %64 : vector<1x16x16xf32> to vector<1x1x16x16xf32>
    %69 = tpu.concatenate %65, %66, %67, %68 in 1 : vector<1x1x16x16xf32>, vector<1x1x16x16xf32>, vector<1x1x16x16xf32>, vector<1x1x16x16xf32> -> vector<1x4x16x16xf32>
    %70 = vector.shape_cast %69 : vector<1x4x16x16xf32> to vector<4x16x16xf32>
    %71 = arith.truncf %70 : vector<4x16x16xf32> to vector<4x16x16xbf16>
    %72 = vector.extract_strided_slice %58 {offsets = [0, 0, 0], sizes = [1, 16, 16], strides = [1, 1, 1]} : vector<1x16x128xf32> to vector<1x16x16xf32>
    %73 = vector.extract_strided_slice %58 {offsets = [0, 0, 16], sizes = [1, 16, 16], strides = [1, 1, 1]} : vector<1x16x128xf32> to vector<1x16x16xf32>
    %74 = vector.extract_strided_slice %58 {offsets = [0, 0, 32], sizes = [1, 16, 16], strides = [1, 1, 1]} : vector<1x16x128xf32> to vector<1x16x16xf32>
    %75 = vector.extract_strided_slice %58 {offsets = [0, 0, 48], sizes = [1, 16, 16], strides = [1, 1, 1]} : vector<1x16x128xf32> to vector<1x16x16xf32>
    %76 = vector.shape_cast %72 : vector<1x16x16xf32> to vector<1x1x16x16xf32>
    %77 = vector.shape_cast %73 : vector<1x16x16xf32> to vector<1x1x16x16xf32>
    %78 = vector.shape_cast %74 : vector<1x16x16xf32> to vector<1x1x16x16xf32>
    %79 = vector.shape_cast %75 : vector<1x16x16xf32> to vector<1x1x16x16xf32>
    %80 = tpu.concatenate %76, %77, %78, %79 in 1 : vector<1x1x16x16xf32>, vector<1x1x16x16xf32>, vector<1x1x16x16xf32>, vector<1x1x16x16xf32> -> vector<1x4x16x16xf32>
    %81 = vector.shape_cast %80 : vector<1x4x16x16xf32> to vector<4x16x16xf32>
    %82 = arith.truncf %81 : vector<4x16x16xf32> to vector<4x16x16xbf16>
    %83 = vector.extract_strided_slice %60 {offsets = [0, 0, 0], sizes = [1, 16, 16], strides = [1, 1, 1]} : vector<1x16x128xf32> to vector<1x16x16xf32>
    %84 = vector.extract_strided_slice %60 {offsets = [0, 0, 16], sizes = [1, 16, 16], strides = [1, 1, 1]} : vector<1x16x128xf32> to vector<1x16x16xf32>
    %85 = vector.extract_strided_slice %60 {offsets = [0, 0, 32], sizes = [1, 16, 16], strides = [1, 1, 1]} : vector<1x16x128xf32> to vector<1x16x16xf32>
    %86 = vector.extract_strided_slice %60 {offsets = [0, 0, 48], sizes = [1, 16, 16], strides = [1, 1, 1]} : vector<1x16x128xf32> to vector<1x16x16xf32>
    %87 = vector.shape_cast %83 : vector<1x16x16xf32> to vector<1x1x16x16xf32>
    %88 = vector.shape_cast %84 : vector<1x16x16xf32> to vector<1x1x16x16xf32>
    %89 = vector.shape_cast %85 : vector<1x16x16xf32> to vector<1x1x16x16xf32>
    %90 = vector.shape_cast %86 : vector<1x16x16xf32> to vector<1x1x16x16xf32>
    %91 = tpu.concatenate %87, %88, %89, %90 in 1 : vector<1x1x16x16xf32>, vector<1x1x16x16xf32>, vector<1x1x16x16xf32>, vector<1x1x16x16xf32> -> vector<1x4x16x16xf32>
    %92 = vector.shape_cast %91 : vector<1x4x16x16xf32> to vector<4x16x16xf32>
    %93 = arith.truncf %92 : vector<4x16x16xf32> to vector<4x16x16xbf16>
    "tpu.trace_start"() <{level = 10 : i32, message = "znd,zmd->znm"}> : () -> ()
    %cst_28 = arith.constant dense<0.000000e+00> : vector<4x16x16xf32>
    %94 = tpu.matmul %71, %82, %cst_28 {dimension_numbers = #tpu.dot_dimension_numbers<[2], [2], [1], [1], [0, 0, 0, 1, 1, 1], [0], [0]>} : vector<4x16x16xbf16>, vector<4x16x16xbf16>, vector<4x16x16xf32> -> vector<4x16x16xf32>
    "tpu.trace_stop"() : () -> ()
    %cst_29 = arith.constant 2.500000e-01 : f32
    %95 = vector.broadcast %cst_29 : f32 to vector<4x16x16xf32>
    %96 = arith.mulf %94, %95 : vector<4x16x16xf32>
    %cst_30 = arith.constant dense<0xFF800000> : vector<4x16xf32>
    %97 = vector.multi_reduction <maximumf>, %96, %cst_30 [2] : vector<4x16x16xf32> to vector<4x16xf32>
    %98 = vector.shape_cast %97 : vector<4x16xf32> to vector<4x16x1xf32>
    %99 = vector.broadcast %98 : vector<4x16x1xf32> to vector<4x16x16xf32>
    %100 = arith.subf %96, %99 : vector<4x16x16xf32>
    %101 = math.exp %100 : vector<4x16x16xf32>
    %cst_31 = arith.constant dense<0.000000e+00> : vector<4x16xf32>
    %102 = vector.multi_reduction <add>, %101, %cst_31 [2] : vector<4x16x16xf32> to vector<4x16xf32>
    %103 = vector.shape_cast %102 : vector<4x16xf32> to vector<4x16x1xf32>
    %104 = tpu.reciprocal %103 {approx = true} : vector<4x16x1xf32> -> vector<4x16x1xf32>
    %105 = vector.broadcast %104 : vector<4x16x1xf32> to vector<4x16x16xf32>
    %106 = arith.mulf %101, %105 : vector<4x16x16xf32>
    %107 = arith.truncf %106 : vector<4x16x16xf32> to vector<4x16x16xbf16>
    "tpu.trace_start"() <{level = 10 : i32, message = "znm,zmd->znd"}> : () -> ()
    %cst_32 = arith.constant dense<0.000000e+00> : vector<4x16x16xf32>
    %108 = tpu.matmul %107, %93, %cst_32 {dimension_numbers = #tpu.dot_dimension_numbers<[2], [1], [1], [2], [0, 0, 0, 1, 1, 2], [0], [0]>} : vector<4x16x16xbf16>, vector<4x16x16xbf16>, vector<4x16x16xf32> -> vector<4x16x16xf32>
    "tpu.trace_stop"() : () -> ()
    %109 = vector.shape_cast %108 : vector<4x16x16xf32> to vector<1x4x16x16xf32>
    %110 = vector.extract_strided_slice %109 {offsets = [0, 0, 0, 0], sizes = [1, 1, 16, 16], strides = [1, 1, 1, 1]} : vector<1x4x16x16xf32> to vector<1x1x16x16xf32>
    %111 = vector.shape_cast %110 : vector<1x1x16x16xf32> to vector<1x16x16xf32>
    %112 = vector.extract_strided_slice %109 {offsets = [0, 1, 0, 0], sizes = [1, 1, 16, 16], strides = [1, 1, 1, 1]} : vector<1x4x16x16xf32> to vector<1x1x16x16xf32>
    %113 = vector.shape_cast %112 : vector<1x1x16x16xf32> to vector<1x16x16xf32>
    %114 = vector.extract_strided_slice %109 {offsets = [0, 2, 0, 0], sizes = [1, 1, 16, 16], strides = [1, 1, 1, 1]} : vector<1x4x16x16xf32> to vector<1x1x16x16xf32>
    %115 = vector.shape_cast %114 : vector<1x1x16x16xf32> to vector<1x16x16xf32>
    %116 = vector.extract_strided_slice %109 {offsets = [0, 3, 0, 0], sizes = [1, 1, 16, 16], strides = [1, 1, 1, 1]} : vector<1x4x16x16xf32> to vector<1x1x16x16xf32>
    %117 = vector.shape_cast %116 : vector<1x1x16x16xf32> to vector<1x16x16xf32>
    %118 = tpu.concatenate %111, %113, %115, %117 in 2 : vector<1x16x16xf32>, vector<1x16x16xf32>, vector<1x16x16xf32>, vector<1x16x16xf32> -> vector<1x16x64xf32>
    %119 = vector.shape_cast %118 : vector<1x16x64xf32> to vector<16x64xf32>
    %120 = arith.truncf %119 : vector<16x64xf32> to vector<16x64xbf16>
    %cst_33 = arith.constant dense<0.000000e+00> : vector<16x128xf32>
    %121 = tpu.matmul %120, %23, %cst_33 {dimension_numbers = #tpu.dot_dimension_numbers<[1], [0], [0], [1], [0, 0, 1, 1], [], []>} : vector<16x64xbf16>, vector<64x128xbf16>, vector<16x128xf32> -> vector<16x128xf32>
    %122 = vector.broadcast %12 : vector<1x128xf32> to vector<16x128xf32>
    %123 = arith.addf %121, %122 : vector<16x128xf32>
    %124 = arith.addf %28, %123 : vector<16x128xf32>
    %cst_34 = arith.constant dense<0.000000e+00> : vector<16xf32>
    %125 = vector.multi_reduction <add>, %124, %cst_34 [1] : vector<16x128xf32> to vector<16xf32>
    %126 = vector.shape_cast %125 : vector<16xf32> to vector<16x1xf32>
    %cst_35 = arith.constant 1.562500e-02 : f32
    %127 = vector.broadcast %cst_35 : f32 to vector<16x1xf32>
    %128 = arith.mulf %126, %127 : vector<16x1xf32>
    %129 = vector.broadcast %128 : vector<16x1xf32> to vector<16x128xf32>
    %130 = arith.subf %124, %129 : vector<16x128xf32>
    %131 = vector.broadcast %7 : vector<1x128xf32> to vector<16x128xf32>
    %132 = arith.mulf %130, %131 : vector<16x128xf32>
    %133 = arith.mulf %132, %132 : vector<16x128xf32>
    %cst_36 = arith.constant dense<0.000000e+00> : vector<16xf32>
    %134 = vector.multi_reduction <add>, %133, %cst_36 [1] : vector<16x128xf32> to vector<16xf32>
    %135 = vector.shape_cast %134 : vector<16xf32> to vector<16x1xf32>
    %cst_37 = arith.constant 1.562500e-02 : f32
    %136 = vector.broadcast %cst_37 : f32 to vector<16x1xf32>
    %137 = arith.mulf %135, %136 : vector<16x1xf32>
    %cst_38 = arith.constant 9.99999974E-6 : f32
    %138 = vector.broadcast %cst_38 : f32 to vector<16x1xf32>
    %139 = arith.addf %137, %138 : vector<16x1xf32>
    %140 = math.rsqrt %139 : vector<16x1xf32>
    %141 = vector.broadcast %140 : vector<16x1xf32> to vector<16x128xf32>
    %142 = arith.mulf %132, %141 : vector<16x128xf32>
    %143 = vector.broadcast %13 : vector<1x128xf32> to vector<16x128xf32>
    %144 = arith.mulf %142, %143 : vector<16x128xf32>
    %145 = vector.broadcast %14 : vector<1x128xf32> to vector<16x128xf32>
    %146 = arith.addf %144, %145 : vector<16x128xf32>
    %147 = arith.truncf %146 : vector<16x128xf32> to vector<16x128xbf16>
    %cst_39 = arith.constant dense<0.000000e+00> : vector<16x128xf32>
    %148 = tpu.matmul %147, %25, %cst_39 {dimension_numbers = #tpu.dot_dimension_numbers<[1], [0], [0], [1], [0, 0, 1, 1], [], []>} : vector<16x128xbf16>, vector<128x128xbf16>, vector<16x128xf32> -> vector<16x128xf32>
    %149 = vector.broadcast %19 : vector<1x128xf32> to vector<16x128xf32>
    %150 = arith.addf %148, %149 : vector<16x128xf32>
    %cst_40 = arith.constant 5.000000e-01 : f32
    %151 = vector.broadcast %cst_40 : f32 to vector<16x128xf32>
    %152 = arith.mulf %151, %150 : vector<16x128xf32>
    %cst_41 = arith.constant 4.471500e-02 : f32
    %153 = vector.broadcast %cst_41 : f32 to vector<16x128xf32>
    %154 = arith.mulf %153, %150 : vector<16x128xf32>
    %155 = arith.mulf %154, %150 : vector<16x128xf32>
    %156 = arith.mulf %155, %150 : vector<16x128xf32>
    %157 = arith.addf %150, %156 : vector<16x128xf32>
    %cst_42 = arith.constant 0.797884583 : f32
    %158 = vector.broadcast %cst_42 : f32 to vector<16x128xf32>
    %159 = arith.mulf %158, %157 : vector<16x128xf32>
    %160 = math.tanh %159 : vector<16x128xf32>
    %cst_43 = arith.constant 1.000000e+00 : f32
    %161 = vector.broadcast %cst_43 : f32 to vector<16x128xf32>
    %162 = arith.addf %161, %160 : vector<16x128xf32>
    %163 = arith.mulf %152, %162 : vector<16x128xf32>
    %164 = arith.truncf %163 : vector<16x128xf32> to vector<16x128xbf16>
    %cst_44 = arith.constant dense<0.000000e+00> : vector<16x128xf32>
    %165 = tpu.matmul %164, %27, %cst_44 {dimension_numbers = #tpu.dot_dimension_numbers<[1], [0], [0], [1], [0, 0, 1, 1], [], []>} : vector<16x128xbf16>, vector<128x128xbf16>, vector<16x128xf32> -> vector<16x128xf32>
    %166 = vector.broadcast %15 : vector<1x128xf32> to vector<16x128xf32>
    %167 = arith.addf %165, %166 : vector<16x128xf32>
    %168 = arith.addf %124, %167 : vector<16x128xf32>
    %c0_45 = arith.constant 0 : index
    %c0_46 = arith.constant 0 : index
    %169 = vector.load %arg15[%c0_45, %c0_46] : memref<16x128xf32, #tpu.memory_space<vmem>>, vector<16x128xf32>
    tpu.vector_store %arg15[%c0_45, %c0_46], %168 {strides = array<i32>} : memref<16x128xf32, #tpu.memory_space<vmem>>, vector<16x128xf32>,
    %c1_i32 = arith.constant 1 : i32
    %170 = arith.cmpi eq, %arg1, %c1_i32 : i32
    %171 = arith.extui %170 : i1 to i32
    %c0_i32_47 = arith.constant 0 : i32
    %172 = arith.cmpi ne, %171, %c0_i32_47 : i32
    scf.if %172 {
      %173 = arith.truncf %168 : vector<16x128xf32> to vector<16x128xbf16>
      %c0_48 = arith.constant 0 : index
      %c0_49 = arith.constant 0 : index
      %174 = vector.load %arg5[%c0_48, %c0_49] : memref<128x128xbf16, #tpu.memory_space<vmem>>, vector<128x128xbf16>
      %cst_50 = arith.constant dense<0.000000e+00> : vector<16x128xf32>
      %175 = tpu.matmul %173, %174, %cst_50 {dimension_numbers = #tpu.dot_dimension_numbers<[1], [0], [0], [1], [0, 0, 1, 1], [], []>} : vector<16x128xbf16>, vector<128x128xbf16>, vector<16x128xf32> -> vector<16x128xf32>
      %c0_51 = arith.constant 0 : index
      %c0_52 = arith.constant 0 : index
      %176 = vector.load %arg6[%c0_51, %c0_52] : memref<1x128xf32, #tpu.memory_space<vmem>>, vector<1x128xf32>
      %177 = vector.broadcast %176 : vector<1x128xf32> to vector<16x128xf32>
      %178 = arith.addf %175, %177 : vector<16x128xf32>
      %c0_53 = arith.constant 0 : index
      %c0_54 = arith.constant 0 : index
      %179 = vector.load %arg14[%c0_53, %c0_54] : memref<16x128xf32, #tpu.memory_space<vmem>>, vector<16x128xf32>
      tpu.vector_store %arg14[%c0_53, %c0_54], %178 {strides = array<i32>} : memref<16x128xf32, #tpu.memory_space<vmem>>, vector<16x128xf32>,
    } else {
    }
    return
  }
  func.func @transform_0(%arg0: i32, %arg1: i32) -> (i32, i32) {
    %c0_i32 = arith.constant 0 : i32
    %c0_i32_0 = arith.constant 0 : i32
    return %arg0, %c0_i32 : i32, i32
  }
  func.func @transform_1(%arg0: i32, %arg1: i32) -> (i32, i32) {
    %c0_i32 = arith.constant 0 : i32
    %c0_i32_0 = arith.constant 0 : i32
    return %arg0, %c0_i32 : i32, i32
  }
  func.func @transform_2(%arg0: i32, %arg1: i32) -> (i32, i32) {
    %c0_i32 = arith.constant 0 : i32
    %c0_i32_0 = arith.constant 0 : i32
    %c0_i32_1 = arith.constant 0 : i32
    return %c0_i32, %c0_i32_0 : i32, i32
  }
  func.func @transform_3(%arg0: i32, %arg1: i32) -> (i32, i32) {
    %c0_i32 = arith.constant 0 : i32
    %c0_i32_0 = arith.constant 0 : i32
    %c0_i32_1 = arith.constant 0 : i32
    return %c0_i32, %c0_i32_0 : i32, i32
  }
  func.func @transform_4(%arg0: i32, %arg1: i32) -> (i32, i32) {
    %c0_i32 = arith.constant 0 : i32
    %c0_i32_0 = arith.constant 0 : i32
    %c0_i32_1 = arith.constant 0 : i32
    return %c0_i32, %c0_i32_0 : i32, i32
  }
  func.func @transform_5(%arg0: i32, %arg1: i32) -> (i32, i32, i32) {
    %c0_i32 = arith.constant 0 : i32
    %c0_i32_0 = arith.constant 0 : i32
    %c0_i32_1 = arith.constant 0 : i32
    return %arg1, %c0_i32, %c0_i32_0 : i32, i32, i32
  }
  func.func @transform_6(%arg0: i32, %arg1: i32) -> (i32, i32, i32) {
    %c0_i32 = arith.constant 0 : i32
    %c0_i32_0 = arith.constant 0 : i32
    %c0_i32_1 = arith.constant 0 : i32
    return %arg1, %c0_i32, %c0_i32_0 : i32, i32, i32
  }
  func.func @transform_7(%arg0: i32, %arg1: i32) -> (i32, i32, i32) {
    %c0_i32 = arith.constant 0 : i32
    %c0_i32_0 = arith.constant 0 : i32
    %c0_i32_1 = arith.constant 0 : i32
    return %arg1, %c0_i32, %c0_i32_0 : i32, i32, i32
  }
  func.func @transform_8(%arg0: i32, %arg1: i32) -> (i32, i32, i32) {
    %c0_i32 = arith.constant 0 : i32
    %c0_i32_0 = arith.constant 0 : i32
    %c0_i32_1 = arith.constant 0 : i32
    return %arg1, %c0_i32, %c0_i32_0 : i32, i32, i32
  }
  func.func @transform_9(%arg0: i32, %arg1: i32) -> (i32, i32, i32) {
    %c0_i32 = arith.constant 0 : i32
    %c0_i32_0 = arith.constant 0 : i32
    %c0_i32_1 = arith.constant 0 : i32
    return %arg1, %c0_i32, %c0_i32_0 : i32, i32, i32
  }
  func.func @transform_10(%arg0: i32, %arg1: i32) -> (i32, i32, i32) {
    %c0_i32 = arith.constant 0 : i32
    %c0_i32_0 = arith.constant 0 : i32
    %c0_i32_1 = arith.constant 0 : i32
    return %arg1, %c0_i32, %c0_i32_0 : i32, i32, i32
  }
  func.func @transform_11(%arg0: i32, %arg1: i32) -> (i32, i32, i32) {
    %c0_i32 = arith.constant 0 : i32
    %c0_i32_0 = arith.constant 0 : i32
    %c0_i32_1 = arith.constant 0 : i32
    return %arg1, %c0_i32, %c0_i32_0 : i32, i32, i32
  }
  func.func @transform_12(%arg0: i32, %arg1: i32) -> (i32, i32) {
    %c0_i32 = arith.constant 0 : i32
    %c0_i32_0 = arith.constant 0 : i32
    return %arg0, %c0_i32 : i32, i32
  }
}

</mosaic_0001>

<bundles_post_ra>
// kernel: tpu_custom_call.1
= control target key start
LH: loop header
LB: loop body
LE: loop exit
PB: predicated region body
PF: predicated region fallthrough
CT: control target
= control target key end

     0   :  { %s4427_s0 = inlined_call_operand.hbm [shape: bf16[32,128], index: 0, kind: input, shape index: {}]   ;;  %s4428_s1 = inlined_call_operand.hbm [shape: f32[32,128], index: 1, kind: input, shape index: {}]   ;;  %s4429_s2 = inlined_call_operand.hbm [shape: bf16[128,128], index: 2, kind: input, shape index: {}]   ;;  %s4430_s3 = inlined_call_operand.hbm [shape: bf16[128,128], index: 3, kind: input, shape index: {}]   ;;  %s4431_s4 = inlined_call_operand.vmem [shape: f32[1,128], index: 4, kind: input, shape index: {}]   ;;  %s4432_s5 = inlined_call_operand.hbm [shape: bf16[2,128,384], index: 5, kind: input, shape index: {}]   ;;  %s4433_s6 = inlined_call_operand.hbm [shape: bf16[2,64,128], index: 6, kind: input, shape index: {}]   ;;  %s4434_s7 = inlined_call_operand.hbm [shape: bf16[2,128,128], index: 7, kind: input, shape index: {}]   ;;  %s4435_s8 = inlined_call_operand.hbm [shape: bf16[2,128,128], index: 8, kind: input, shape index: {}]   ;;  %s4436_s9 = inlined_call_operand.vmem [shape: f32[2,8,128], index: 9, kind: input, shape index: {}]   ;;  %s4437_s10 = inlined_call_operand.vmem [shape: f32[2,1,384], index: 10, kind: input, shape index: {}]   ;;  %s4438_s11 = inlined_call_operand.vmem [shape: f32[2,1,128], index: 11, kind: input, shape index: {}]   ;;  %s4439_s12 = inlined_call_operand.hbm [shape: f32[32,128], index: 12, kind: output, shape index: {}]  }
   0x1   :  { %4474 = sst [smem:[#allocation38_spill]] %s4427_s0 }
   0x2   :  { %4475 = sst [smem:[#allocation39_spill]] %s4428_s1 }
   0x3   :  { %4476 = sst [smem:[#allocation40_spill]] %s4429_s2 }
   0x4   :  { %4477 = sst [smem:[#allocation41_spill]] %s4430_s3 }
   0x5   :  { %4478 = sst [smem:[#allocation42_spill]] %s4431_s4 }
   0x6   :  { %4479 = sst [smem:[#allocation43_spill]] %s4432_s5 }
   0x7   :  { %4480 = sst [smem:[#allocation44_spill]] %s4433_s6 }
   0x8   :  { %4481 = sst [smem:[#allocation45_spill]] %s4434_s7 }
   0x9   :  { %4482 = sst [smem:[#allocation46_spill]] %s4436_s9 }
   0xa   :  { %4483 = sst [smem:[#allocation47_spill]] %s4437_s10 }
   0xb   :  { %4484 = sst [smem:[#allocation48_spill]] %s4438_s11 }
   0xc   :  { %4485 = sst [smem:[#allocation49_spill]] %s4439_s12 }
   0xd   :  { %17 = vsyncpa [#allocation4], 0 }
   0xe   :  { %19 = vsyncpa [#allocation4 + $0x1], 0 }
   0xf   :  { %20 = vsyncpa [#allocation7], 0 }
  0x10   :  { %22 = vsyncpa [#allocation7 + $0x1], 0 }
  0x11   :  { %23 = vsyncpa [#allocation10], 0 }
  0x12   :  { %24 = vsyncpa [#allocation5], 0 }
  0x13   :  { %26 = vsyncpa [#allocation5 + $0x1], 0  ;;  %s3619_s21 = smov 0   ;;  %s3621_s22 = smov 0  }
  0x14   :  { %s3623_s23 = smov 0   ;;  %s3625_s24 = smov 0  }
  0x15   :  { %s3627_s25 = smov 0   ;;  %s3629_s26 = smov 0  }
  0x16   :  { %s3631_s27 = smov 0   ;;  %s3633_s28 = smov 0  }
  0x17   :  { %s3635_s29 = smov 0   ;;  %s3637_s30 = smov 0  }
  0x18   :  { %s3639_s13 = smov 0  }
  0x19 LB: > { %4486 = sst [smem:[#allocation25_spill]] %s3494_s24  ;;  %s3673_s14 = sadd.s32 4294967295, %s3522_s13   ;;  %s3522_s13 = sphi %s3639_s13, %s32_s13   ;;  %s3518_s30 = sphi %s3637_s30, %s4558_s30   ;;  %s3514_s29 = sphi %s3635_s29, %s4565_s29   ;;  %s3510_s28 = sphi %s3633_s28, %s4564_s28   ;;  %s3506_s27 = sphi %s3631_s27, %s4563_s27   ;;  %s3502_s26 = sphi %s3629_s26, %s4555_s26   ;;  %s3498_s25 = sphi %s3627_s25, %s4554_s25   ;;  %s3494_s24 = sphi %s3625_s24, %s4562_s24   ;;  %s3490_s23 = sphi %s3623_s23, %s4561_s23   ;;  %s3486_s22 = sphi %s3621_s22, %s4560_s22   ;;  %s3482_s21 = sphi %s3619_s21, %s4559_s21  }
  0x1a   : > { %4487 = sst [smem:[#allocation26_spill]] %s3498_s25  ;;  %s2447_s15 = sadd.s32 4294967294, %s3522_s13  }
  0x1b   : > { %4488 = sst [smem:[#allocation27_spill]] %s3502_s26  ;;  %p64_p0 = scmp.ne.s32.totalorder %s3498_s25, %s3494_s24 }
  0x1c   : > { %4489 = sst [smem:[#allocation28_spill]] %s3506_s27  ;;  %p4443_p1 = scmp.eq.s32.totalorder %s3673_s14, 0 }
  0x1d   : > { %4490 = sst [smem:[#allocation29_spill]] %s3510_s28  ;;  %p179_p2 = scmp.ne.s32.totalorder %s3486_s22, %s3482_s21 }
  0x1e   : > { %4491 = sst [smem:[#allocation30_spill]] %s3518_s30  ;;  %p3683_p4 = por %p4443_p1, %p64_p0 }
  0x1f   : > { %p365_p5 = scmp.eq.s32.totalorder %s2447_s15, 3  ;;  %p3689_p6 = por %p179_p2, %p4443_p1 }
  0x20   : > { %s4492_s16 = scalar_select %p3683_p4, 1, 0 }
  0x21   : > { %s4494_s17 = scalar_select %p3689_p6, 1, 0 }
  0x22   : > { %4493 = sst [smem:[#allocation31_spill]] %s4492_s16  ;;  %p2448_p7 = scmp.ge.s32.totalorder %s3522_s13, 1 }
  0x23   : > { %4495 = sst [smem:[#allocation32_spill]] %s4494_s17  ;;  %p3694_p8 = por %p365_p5, %p64_p0 }
  0x24   : > { %p372_p9 = scmp.lt.s32.totalorder %s3522_s13, 5  ;;  %s3524_s20 = smov [#allocation8]  }
  0x25   : > { %s4496_s18 = scalar_select %p3694_p8, 1, 0 }
  0x26   : > { %p3699_p10 = pnand %p2448_p7, %p372_p9  ;;  %s384_s21 = sshll.u32 %s3524_s20, 4  ;;  %s385_s21 = int_to_ptr.vmem [resolvable:$true] %s384_s21 }
  0x27   : > { %4497 = sst [smem:[#allocation33_spill]] %s4496_s18  ;;  %s4500_s2 = sld [smem:[#allocation40_spill]] }
  0x28   : > { %s4498_s19 = scalar_select %p3699_p10, 1, 0 }
  0x29   : > { %p2816_p11 = pneg %p3699_p10 }
  0x2b   : > { %p3707_p12 = pnand %p2816_p11, %p4443_p1 }
  0x2d   : > { %s4499_s15 = scalar_select %p3707_p12, 1, 0 }
  0x2e   : > { %s3136_s18 = scalar_lea.hbm %s4500_s2, 1024  ;;  %p4460_p0 = pneg %p3707_p12 }
  0x2f   : > { %p3137_p13 = scmp.ne.s32.totalorder %s4500_s2, %s3136_s18  ;;  %p3143_p7 = scmp.lt.u32.totalorder %s3136_s18, %s4500_s2 }
  0x31   : > { %p3139_p2 = pnand %p4460_p0, %p3137_p13 }
  0x33   : > { %p3140_p5 = pneg %p3139_p2 }
  0x35   : > { %p3145_p9 = pnand %p3143_p7, %p3140_p5 }
  0x37   : > { %3148 = shalt.err (!%p3145_p9)
}
  0x38   : > { %s3149_s12 = scalar_lea.vmem %s385_s21, 1024  ;;  %p3157_p8 = scmp.lt.s32.totalorder %s385_s21, %s385_s21 }
  0x39   : > { %p3150_p11 = scmp.ne.s32.totalorder %s385_s21, %s3149_s12  ;;  %p3158_p6 = scmp.lt.s32.totalorder %s3149_s12, %s3149_s12 }
  0x3b   : > { %p3152_p1 = pnand %p3150_p11, %p4460_p0  ;;  %p3159_p4 = por %p3158_p6, %p3157_p8 }
  0x3d   : > { %p3153_p3 = pneg %p3152_p1 }
  0x3f   : > { %p3160_p10 = pnand %p3159_p4, %p3153_p3 }
  0x41   : > { %3163 = shalt.err (!%p3160_p10)
}
  0x42   : > { %s4447_s4 = smov 64   ;;  %s4449_s10 = smov 4  }
  0x43   : > { %2819 = dma.hbm_to_vmem [thread:$0]  (!%p3707_p12), %s4500_s2, 1024, %s385_s21, [#allocation7], %s4447_s4, %s4447_s4, %s4449_s10  }
  0x44   : > { %s41_s18 = sadd.s32 1, %s3514_s29  ;;  %s44_s20 = sadd.s32 1, %s3518_s30 }
  0x45   : > { %p42_p1 = scmp.ge.s32.totalorder %s41_s18, 2  ;;  %s51_s12 = sadd.s32 1, %s3502_s26 }
  0x46   : > { %p58_p3 = scmp.ne.s32.totalorder %s3502_s26, %s3498_s25  ;;  %p4462_p4 = scmp.eq.s32.totalorder %s3522_s13, 0 }
  0x47   : > { %s4567_s18 = smov (%p42_p1, %s41_s18), 0  ;;  %s4569_s20 = smov (!%p42_p1, %s44_s20), %s3518_s30 }
  0x48   : > { %4501 = sst [smem:[#allocation34_spill]] %s4567_s18  ;;  %p4502_p6 = scmp.eq.s32.totalorder %s3673_s14, 3 }
  0x49   : > { %p46_p10 = scmp.ge.s32.totalorder %s4569_s20, 2  ;;  %p4461_p13 = scmp.lt.s32.totalorder %s3522_s13, 4 }
  0x4a   : > { %p3747_p8 = por %p4502_p6, %p58_p3  ;;  %p3754_p2 = por %p4462_p4, %p58_p3 }
  0x4b   : > { %s414_s24 = sand.u32 1, %s3522_s13   ;;  %s4571_s20 = smov (%p46_p10, %s4569_s20), 0 }
  0x4c   : > { %s4503_s11 = scalar_select %p3747_p8, 1, 0 }
  0x4d   : > { %4506 = sst [smem:[#allocation36_spill]] %s4571_s20  ;;  %s416_s28 = sand.u32 1, %s3502_s26  }
  0x4e   : > { %4504 = sst [smem:[#allocation35_spill]] %s4503_s11  ;;  %s48_s4 = ssub.s32 %s3518_s30, %s4571_s20 }
  0x4f   : > { %s2452_s10 = sshll.u32 %s416_s28, 3  ;;  %p49_p5 = scmp.eq.s32.totalorder %s48_s4, 0 }
  0x50   : > { %s2558_s2 = sshll.u32 %s3518_s30, 7  ;;  %s418_s11 = scalar_lea.vmem [#allocation3], %s2452_s10 }
  0x51   : > { %s425_s9 = sshll.u32 %s418_s11, 4  ;;  %s4508_s0 = sld [smem:[#allocation38_spill]]  ;;  %s3773_s9 = int_to_ptr.vmem [resolvable:$true] %s425_s9 }
  0x52   : > { %s3766_s27 = scalar_select %p49_p5, %s3502_s26, %s51_s12  }
  0x53   : > { %p3779_p7 = pnand %p4461_p13, %p3754_p2  ;;  %s3783_s11 = sshll.u32 %s416_s28, 4 }
  0x54   : > { %4507 = sst [smem:[#allocation37_spill]] %s3766_s27  ;;  %s2559_s10 = sshll.u32 %s3518_s30, 8 }
  0x55   : > { %p3166_p11 = pneg %p3779_p7 }
  0x57   : > { %s3771_s25 = scalar_lea.hbm %s4508_s0, %s2558_s2  ;;  %s3788_s2 = scalar_lea.sflag [#allocation4], %s414_s24 }
  0x58   : > { %s3164_s16 = scalar_lea.hbm %s3771_s25, 128  ;;  %s3169_s21 = scalar_lea.hbm %s4508_s0, 256 }
  0x59   : > { %p3165_p9 = scmp.ne.s32.totalorder %s3771_s25, %s3164_s16  ;;  %p3170_p6 = scmp.lt.u32.totalorder %s3771_s25, %s4508_s0 }
  0x5a   : > { %p3171_p10 = scmp.lt.u32.totalorder %s3169_s21, %s3164_s16  ;;  %p3173_p5 = scmp.lt.u32.totalorder %s3164_s16, %s3771_s25 }
  0x5b   : > { %p3167_p1 = pnand %p3166_p11, %p3165_p9 }
  0x5c   : > { %p3172_p2 = por %p3171_p10, %p3170_p6 }
  0x5d   : > { %p3168_p3 = pneg %p3167_p1 }
  0x5e   : > { %p3174_p0 = por %p3173_p5, %p3172_p2 }
  0x60   : > { %p3175_p13 = pnand %p3174_p0, %p3168_p3 }
  0x62   : > { %3178 = shalt.err (!%p3175_p13)
}
  0x63   : > { %s3179_s28 = scalar_lea.vmem %s3773_s9, 128  ;;  %s3527_s17 = smov [#allocation3]  }
  0x64   : > { %p3180_p9 = scmp.ne.s32.totalorder %s3773_s9, %s3179_s28  ;;  %s3184_s12 = sshll.u32 %s3527_s17, 4  ;;  %s3185_s12 = int_to_ptr.vmem [resolvable:$false] %s3184_s12 }
  0x65   : > { %s3186_s27 = scalar_lea.vmem %s3185_s12, 256  ;;  %p3187_p8 = scmp.lt.s32.totalorder %s3773_s9, %s3185_s12 }
  0x66   : > { %p3182_p1 = pnand %p3180_p9, %p3166_p11  ;;  %p3188_p6 = scmp.lt.s32.totalorder %s3186_s27, %s3179_s28 }
  0x68   : > { %p3183_p4 = pneg %p3182_p1  ;;  %p3189_p10 = por %p3188_p6, %p3187_p8 }
  0x6a   : > { %p3190_p2 = pnand %p3189_p10, %p3183_p4 }
  0x6c   : > { %3193 = shalt.err (!%p3190_p2)
}
  0x6d   : > { %s4510_s20 = smov 4   ;;  %s4511_s16 = smov 64  }
  0x6e   : > { %2826 = dma.hbm_to_vmem [thread:$0]  (!%p3779_p7), %s3771_s25, 128, %s3773_s9, %s3788_s2, %s4511_s16, %s4511_s16, %s4510_s20  }
  0x6f   : > { %s439_s21 = scalar_lea.vmem [#allocation6], %s3783_s11  ;;  %s4512_s1 = sld [smem:[#allocation39_spill]] }
  0x70   : > { %s446_s17 = sshll.u32 %s439_s21, 4  ;;  %s3831_s0 = scalar_lea.sflag [#allocation7], %s414_s24  ;;  %s3827_s17 = int_to_ptr.vmem [resolvable:$true] %s446_s17 }
  0x75   : > { %s3825_s27 = scalar_lea.hbm %s4512_s1, %s2559_s10  ;;  %s3199_s11 = scalar_lea.hbm %s4512_s1, 512 }
  0x76   : > { %s3194_s26 = scalar_lea.hbm %s3825_s27, 256  ;;  %p3200_p13 = scmp.lt.u32.totalorder %s3825_s27, %s4512_s1 }
  0x77   : > { %p3195_p0 = scmp.ne.s32.totalorder %s3825_s27, %s3194_s26  ;;  %p3201_p3 = scmp.lt.u32.totalorder %s3199_s11, %s3194_s26 }
  0x78   : > { %p3203_p9 = scmp.lt.u32.totalorder %s3194_s26, %s3825_s27 }
  0x79   : > { %p3197_p4 = pnand %p3195_p0, %p3166_p11  ;;  %p3202_p5 = por %p3201_p3, %p3200_p13 }
  0x7b   : > { %p3198_p8 = pneg %p3197_p4  ;;  %p3204_p1 = por %p3203_p9, %p3202_p5 }
  0x7d   : > { %p3205_p6 = pnand %p3204_p1, %p3198_p8 }
  0x7f   : > { %3208 = shalt.err (!%p3205_p6)
}
  0x80   : > { %s3209_s24 = scalar_lea.vmem %s3827_s17, 256  ;;  %s3528_s28 = smov [#allocation6]  }
  0x81   : > { %p3210_p10 = scmp.ne.s32.totalorder %s3827_s17, %s3209_s24  ;;  %s3214_s12 = sshll.u32 %s3528_s28, 4  ;;  %s3215_s12 = int_to_ptr.vmem [resolvable:$false] %s3214_s12 }
  0x82   : > { %s3216_s9 = scalar_lea.vmem %s3215_s12, 512  ;;  %p3217_p4 = scmp.lt.s32.totalorder %s3827_s17, %s3215_s12 }
  0x83   : > { %p3212_p2 = pnand %p3210_p10, %p3166_p11  ;;  %p3218_p13 = scmp.lt.s32.totalorder %s3216_s9, %s3209_s24 }
  0x85   : > { %p3213_p0 = pneg %p3212_p2  ;;  %p3219_p3 = por %p3218_p13, %p3217_p4 }
  0x87   : > { %p3220_p5 = pnand %p3219_p3, %p3213_p0 }
  0x89   : > { %3223 = shalt.err (!%p3220_p5)
}
  0x8a   : > { %s3529_s26 = smov 128   ;;  %s3530_s25 = smov 8  }
  0x8b   : > { %2829 = dma.hbm_to_vmem [thread:$0]  (!%p3779_p7), %s3825_s27, 256, %s3827_s17, %s3831_s0, %s3529_s26, %s3529_s26, %s3530_s25  }
  0x8c   : > { %s163_s11 = ssub.s32 %s3514_s29, %s4567_s18  ;;  %s166_s10 = sadd.s32 1, %s3490_s23 }
  0x8d   : > { %p164_p11 = scmp.eq.s32.totalorder %s163_s11, 0  ;;  %p173_p8 = scmp.ne.s32.totalorder %s3490_s23, %s3486_s22 }
  0x8e   : > { %s3863_s21 = sand.u32 1, %s3490_s23   ;;  %p4513_p9 = scmp.eq.s32.totalorder %s3522_s13, 0 }
  0x8f   : > { %s3866_s24 = scalar_select %p164_p11, %s3490_s23, %s166_s10  }
  0x90   : > { %p175_p1 = por %p173_p8, %p4513_p9  ;;  %s2790_s28 = smul.u32 192, %s3863_s21 }
  0x91   : > { %s2791_s12 = smul.u32 3072, %s3514_s29  ;;  %p4514_p6 = scmp.lt.s32.totalorder %s3522_s13, 4 }
  0x92   : > { %s4516_s5 = sld [smem:[#allocation43_spill]]  ;;  %s460_s26 = scalar_lea.vmem [#allocation11], %s2790_s28 }
  0x93   : > { %p3874_p10 = pnand %p4514_p6, %p175_p1  ;;  %s467_s25 = sshll.u32 %s460_s26, 4  ;;  %s3883_s25 = int_to_ptr.vmem [resolvable:$true] %s467_s25 }
  0x95   : > { %s4515_s9 = scalar_select %p3874_p10, 1, 0 }
  0x96   : > { %p3890_p2 = pneg %p3874_p10 }
  0x98   : > { %s3881_s27 = scalar_lea.hbm %s4516_s5, %s2791_s12  ;;  %s3229_s17 = scalar_lea.hbm %s4516_s5, 6144 }
  0x99   : > { %s3224_s10 = scalar_lea.hbm %s3881_s27, 3072  ;;  %p3230_p13 = scmp.lt.u32.totalorder %s3881_s27, %s4516_s5 }
  0x9a   : > { %p3225_p7 = scmp.ne.s32.totalorder %s3881_s27, %s3224_s10  ;;  %p3231_p3 = scmp.lt.u32.totalorder %s3229_s17, %s3224_s10 }
  0x9b   : > { %s4517_s1 = scalar_select %p3890_p2, 1, 0 }
  0x9c   : > { %p3227_p0 = pnand %p3890_p2, %p3225_p7  ;;  %p3232_p5 = por %p3231_p3, %p3230_p13 }
  0x9d   : > { %p3233_p11 = scmp.lt.u32.totalorder %s3224_s10, %s3881_s27 }
  0x9e   : > { %p3228_p4 = pneg %p3227_p0 }
  0x9f   : > { %p3234_p8 = por %p3233_p11, %p3232_p5 }
  0xa1   : > { %p3235_p9 = pnand %p3234_p8, %p3228_p4 }
  0xa3   : > { %3238 = shalt.err (!%p3235_p9)
}
  0xa4   : > { %s3239_s11 = scalar_lea.vmem %s3883_s25, 3072  ;;  %s3531_s12 = smov [#allocation11]  }
  0xa5   : > { %p3240_p1 = scmp.ne.s32.totalorder %s3883_s25, %s3239_s11  ;;  %s3244_s4 = sshll.u32 %s3531_s12, 4  ;;  %s3245_s4 = int_to_ptr.vmem [resolvable:$false] %s3244_s4 }
  0xa6   : > { %s3246_s28 = scalar_lea.vmem %s3245_s4, 6144  ;;  %p3247_p0 = scmp.lt.s32.totalorder %s3883_s25, %s3245_s4 }
  0xa7   : > { %p3242_p6 = pnand %p3240_p1, %p3890_p2  ;;  %p3248_p12 = scmp.lt.s32.totalorder %s3246_s28, %s3239_s11 }
  0xa9   : > { %p3243_p7 = pneg %p3242_p6  ;;  %p3249_p13 = por %p3248_p12, %p3247_p0 }
  0xab   : > { %p3250_p3 = pnand %p3249_p13, %p3243_p7 }
  0xad   : > { %3253 = shalt.err (!%p3250_p3)
}
  0xae   : > { %s3532_s10 = smov 192   ;;  %s3533_s17 = smov 12  }
  0xaf   : > { %2832 = dma.hbm_to_vmem [thread:$0]  (!%p3874_p10), %s3881_s27, 3072, %s3883_s25, %s3788_s2, %s3532_s10, %s3532_s10, %s3533_s17  }
  0xb0   : > { %s2560_s26 = sshll.u32 %s3514_s29, 9  ;;  %s4518_s6 = sld [smem:[#allocation44_spill]] }
  0xb1   : > { %s4519_s11 = sshll.u32 %s3863_s21, 5 }
  0xb2   : > { %s481_s28 = scalar_lea.vmem [#allocation12], %s4519_s11 }
  0xb3   : > { %s488_s18 = sshll.u32 %s481_s28, 4  ;;  %s3922_s18 = int_to_ptr.vmem [resolvable:$true] %s488_s18 }
  0xb6   : > { %s3918_s4 = scalar_lea.hbm %s4518_s6, %s2560_s26  ;;  %s3259_s5 = scalar_lea.hbm %s4518_s6, 1024 }
  0xb7   : > { %s3254_s30 = scalar_lea.hbm %s3918_s4, 512  ;;  %p3260_p11 = scmp.lt.u32.totalorder %s3918_s4, %s4518_s6 }
  0xb8   : > { %p3255_p12 = scmp.ne.s32.totalorder %s3918_s4, %s3254_s30  ;;  %p3261_p8 = scmp.lt.u32.totalorder %s3259_s5, %s3254_s30 }
  0xb9   : > { %p3263_p1 = scmp.lt.u32.totalorder %s3254_s30, %s3918_s4 }
  0xba   : > { %p3257_p4 = pnand %p3255_p12, %p3890_p2  ;;  %p3262_p9 = por %p3261_p8, %p3260_p11 }
  0xbc   : > { %p3258_p5 = pneg %p3257_p4  ;;  %p3264_p6 = por %p3263_p1, %p3262_p9 }
  0xbe   : > { %p3265_p7 = pnand %p3264_p6, %p3258_p5 }
  0xc0   : > { %3268 = shalt.err (!%p3265_p7)
}
  0xc1   : > { %s3269_s26 = scalar_lea.vmem %s3922_s18, 512  ;;  %s3534_s12 = smov [#allocation12]  }
  0xc2   : > { %p3270_p0 = scmp.ne.s32.totalorder %s3922_s18, %s3269_s26  ;;  %s3274_s11 = sshll.u32 %s3534_s12, 4  ;;  %s3275_s11 = int_to_ptr.vmem [resolvable:$false] %s3274_s11 }
  0xc3   : > { %s3276_s28 = scalar_lea.vmem %s3275_s11, 1024  ;;  %p3277_p12 = scmp.lt.s32.totalorder %s3922_s18, %s3275_s11 }
  0xc4   : > { %p3272_p13 = pnand %p3270_p0, %p3890_p2  ;;  %p3278_p4 = scmp.lt.s32.totalorder %s3276_s28, %s3269_s26 }
  0xc6   : > { %p3273_p3 = pneg %p3272_p13  ;;  %p3279_p11 = por %p3278_p4, %p3277_p12 }
  0xc8   : > { %p3280_p8 = pnand %p3279_p11, %p3273_p3 }
  0xca   : > { %3283 = shalt.err (!%p3280_p8)
}
  0xcb   : > { %2835 = dma.hbm_to_vmem [thread:$0]  (!%p3874_p10), %s3918_s4, 512, %s3922_s18, %s3831_s0, %s4511_s16, %s4511_s16, %s4510_s20  }
  0xcc   : > { %s3535_s30 = smov [#allocation9]   ;;  %s2462_s25 = sshll.u32 %s3863_s21, 6 }
  0xcd   : > { %s397_s27 = sshll.u32 %s3535_s30, 4  ;;  %s4520_s3 = sld [smem:[#allocation41_spill]]  ;;  %s398_s27 = int_to_ptr.vmem [resolvable:$true] %s397_s27 }
  0xce   : > { %p4521_p9 = scmp.ne.s32.totalorder %s4499_s15, 0 }
  0xd0   : > { %p4522_p1 = pneg %p4521_p9 }
  0xd3   : > { %s3284_s17 = scalar_lea.hbm %s4520_s3, 1024 }
  0xd4   : > { %p3285_p5 = scmp.ne.s32.totalorder %s4520_s3, %s3284_s17  ;;  %p3291_p0 = scmp.lt.u32.totalorder %s3284_s17, %s4520_s3 }
  0xd6   : > { %p3287_p6 = pnand %p3285_p5, %p4522_p1 }
  0xd8   : > { %p3288_p7 = pneg %p3287_p6 }
  0xda   : > { %p3293_p13 = pnand %p3291_p0, %p3288_p7 }
  0xdc   : > { %3296 = shalt.err (!%p3293_p13)
}
  0xdd   : > { %s3297_s18 = scalar_lea.vmem %s398_s27, 1024  ;;  %p4523_p12 = pmov %p4522_p1 }
  0xde   : > { %p3298_p3 = scmp.ne.s32.totalorder %s398_s27, %s3297_s18  ;;  %p3305_p8 = scmp.lt.s32.totalorder %s398_s27, %s398_s27 }
  0xdf   : > { %p3306_p10 = scmp.lt.s32.totalorder %s3297_s18, %s3297_s18 }
  0xe0   : > { %p3300_p4 = pnand %p3298_p3, %p4523_p12 }
  0xe1   : > { %p3307_p2 = por %p3306_p10, %p3305_p8 }
  0xe2   : > { %p3301_p11 = pneg %p3300_p4 }
  0xe4   : > { %p3308_p1 = pnand %p3307_p2, %p3301_p11 }
  0xe6   : > { %3311 = shalt.err (!%p3308_p1)
}
  0xe7   : > { %2822 = dma.hbm_to_vmem [thread:$0]  (!%p4521_p9), %s4520_s3, 1024, %s398_s27, [#allocation10], %s4511_s16, %s4511_s16, %s4510_s20  }
  0xe8   : > { %s2561_s5 = sshll.u32 %s3514_s29, 10  ;;  %s502_s10 = scalar_lea.vmem [#allocation13], %s2462_s25 }
  0xe9   : > { %s509_s17 = sshll.u32 %s502_s10, 4  ;;  %s4524_s7 = sld [smem:[#allocation45_spill]]  ;;  %s3983_s17 = int_to_ptr.vmem [resolvable:$true] %s509_s17 }
  0xea   : > { %p4525_p2 = scmp.ne.s32.totalorder %s4517_s1, 0 }
  0xef   : > { %s3981_s15 = scalar_lea.hbm %s4524_s7, %s2561_s5  ;;  %s3317_s18 = scalar_lea.hbm %s4524_s7, 2048 }
  0xf0   : > { %s3312_s11 = scalar_lea.hbm %s3981_s15, 1024  ;;  %p3318_p6 = scmp.lt.u32.totalorder %s3981_s15, %s4524_s7 }
  0xf1   : > { %p3313_p10 = scmp.ne.s32.totalorder %s3981_s15, %s3312_s11  ;;  %p3319_p7 = scmp.lt.u32.totalorder %s3317_s18, %s3312_s11 }
  0xf2   : > { %p3321_p13 = scmp.lt.u32.totalorder %s3312_s11, %s3981_s15 }
  0xf3   : > { %p3315_p5 = pnand %p3313_p10, %p4525_p2  ;;  %p3320_p0 = por %p3319_p7, %p3318_p6 }
  0xf5   : > { %p3316_p9 = pneg %p3315_p5  ;;  %p3322_p3 = por %p3321_p13, %p3320_p0 }
  0xf7   : > { %p3323_p12 = pnand %p3322_p3, %p3316_p9 }
  0xf9   : > { %3326 = shalt.err (!%p3323_p12)
}
  0xfa   : > { %s3327_s10 = scalar_lea.vmem %s3983_s17, 1024  ;;  %s3536_s26 = smov [#allocation13]  }
  0xfb   : > { %p3328_p4 = scmp.ne.s32.totalorder %s3983_s17, %s3327_s10  ;;  %s3332_s12 = sshll.u32 %s3536_s26, 4  ;;  %s3333_s12 = int_to_ptr.vmem [resolvable:$false] %s3332_s12 }
  0xfc   : > { %s3334_s27 = scalar_lea.vmem %s3333_s12, 2048  ;;  %p3335_p1 = scmp.lt.s32.totalorder %s3983_s17, %s3333_s12 }
  0xfd   : > { %p3330_p11 = pnand %p3328_p4, %p4525_p2  ;;  %p3336_p10 = scmp.lt.s32.totalorder %s3334_s27, %s3327_s10 }
  0xff   : > { %p3331_p8 = pneg %p3330_p11  ;;  %p3337_p5 = por %p3336_p10, %p3335_p1 }
 0x101   : > { %p3338_p6 = pnand %p3337_p5, %p3331_p8 }
 0x103   : > { %3341 = shalt.err (!%p3338_p6)
}
 0x104   : > { %p4526_p9 = scmp.ne.s32.totalorder %s4515_s9, 0  ;;  %s4015_s18 = scalar_lea.hbm %s4435_s8, %s2561_s5 }
 0x105   : > { %s523_s4 = scalar_lea.vmem [#allocation14], %s2462_s25  ;;  %s3342_s10 = scalar_lea.hbm %s4015_s18, 1024 }
 0x106   : > { %2838 = dma.hbm_to_vmem [thread:$0]  (!%p4526_p9), %s3981_s15, 1024, %s3983_s17, %s3788_s2, %s4511_s16, %s4511_s16, %s4510_s20  }
 0x107   : > { %s530_s30 = sshll.u32 %s523_s4, 4  ;;  %p3343_p7 = scmp.ne.s32.totalorder %s4015_s18, %s3342_s10  ;;  %s4019_s30 = int_to_ptr.vmem [resolvable:$true] %s530_s30 }
 0x108   : > { %s3347_s15 = scalar_lea.hbm %s4435_s8, 2048  ;;  %p3348_p3 = scmp.lt.u32.totalorder %s4015_s18, %s4435_s8 }
 0x109   : > { %p3345_p0 = pnand %p3343_p7, %p4525_p2  ;;  %p3349_p12 = scmp.lt.u32.totalorder %s3347_s15, %s3342_s10 }
 0x10a   : > { %p3351_p11 = scmp.lt.u32.totalorder %s3342_s10, %s4015_s18 }
 0x10b   : > { %p3346_p13 = pneg %p3345_p0  ;;  %p3350_p4 = por %p3349_p12, %p3348_p3 }
 0x10d   : > { %p3352_p8 = por %p3351_p11, %p3350_p4 }
 0x10f   : > { %p3353_p1 = pnand %p3352_p8, %p3346_p13 }
 0x111   : > { %3356 = shalt.err (!%p3353_p1)
}
 0x112   : > { %s3357_s21 = scalar_lea.vmem %s4019_s30, 1024  ;;  %s3537_s25 = smov [#allocation14]  }
 0x113   : > { %p3358_p10 = scmp.ne.s32.totalorder %s4019_s30, %s3357_s21  ;;  %s3362_s12 = sshll.u32 %s3537_s25, 4  ;;  %s3363_s12 = int_to_ptr.vmem [resolvable:$false] %s3362_s12 }
 0x114   : > { %s3364_s27 = scalar_lea.vmem %s3363_s12, 2048  ;;  %p3365_p7 = scmp.lt.s32.totalorder %s4019_s30, %s3363_s12 }
 0x115   : > { %p3360_p5 = pnand %p3358_p10, %p4525_p2  ;;  %p3366_p0 = scmp.lt.s32.totalorder %s3364_s27, %s3357_s21 }
 0x117   : > { %p3361_p6 = pneg %p3360_p5  ;;  %p3367_p3 = por %p3366_p0, %p3365_p7 }
 0x119   : > { %p3368_p12 = pnand %p3367_p3, %p3361_p6 }
 0x11b   : > { %3371 = shalt.err (!%p3368_p12)
}
 0x11c   : > { %2841 = dma.hbm_to_vmem [thread:$0]  (!%p4526_p9), %s4015_s18, 1024, %s4019_s30, %s3831_s0, %s4511_s16, %s4511_s16, %s4510_s20  }
 0x11d   : > { %p4527_p2 = scmp.ne.s32.totalorder %s4498_s19, 0 }
 0x11e   : > { %s4528_s1 = sld [smem:[#allocation26_spill]] (!%p4527_p2)  ;;  %s4529_s11 = sld [smem:[#allocation31_spill]] (!%p4527_p2) }
 0x11f   : > { %562 = sbr.rel (%p4527_p2) target bundleno = 3435 (0xd6b), region = 68  ;;  %s564_s28 = sand.u32 (!%p4527_p2), 1, %s3673_s14  }
 0x120   : > { %s565_s2 = scalar_lea.sflag (!%p4527_p2), [#allocation4], %s564_s28 }
 0x124   : > { %s4050_s4 = sand.u32 (!%p4527_p2), 1, %s4528_s1   ;;  %p4530_p13 = scmp.ne.s32.totalorder (!%p4527_p2), %s4529_s11, 0 }
 0x125   : > { %s2469_s10 = sshll.u32 (!%p4527_p2), %s4050_s4, 3 }
 0x126   : > { %s4053_s9 = scalar_lea.vmem [#allocation3], %s2469_s10 }
 0x127   : > { %3445 = dma.done.wait (%p4530_p13), %s565_s2, 128  }
 0x128   : > { %3447 = vsyncadd (%p4530_p13), %s565_s2, 4294967168  ;;  %s4473_s0 = sshll.u32 %s4050_s4, 4  ;;  %s574_s19 = scalar_lea.sflag [#allocation7], %s564_s28 }
 0x129   : > { %s4062_s20 = scalar_lea.vmem [#allocation6], %s4473_s0 }
 0x12a   : > { %3449 = dma.done.wait (%p4530_p13), %s574_s19, 256  }
 0x12b   : > { %3451 = vsyncadd (%p4530_p13), %s574_s19, 4294967040  ;;  %p4531_p9 = scmp.eq.s32.totalorder %s3673_s14, 0 }
 0x12d   : > { %3453 = dma.done.wait (%p4531_p9), [#allocation7], 1024   ;;  %p4532_p4 = pmov %p4531_p9 }
 0x12f   : > { %3455 = vsyncadd (%p4532_p4), [#allocation7], 4294966272  ;;  %p4533_p11 = pmov %p4532_p4 }
 0x130   : > { %p4534_p8 = pmov %p4532_p4 }
 0x131   : > { %3457 = dma.done.wait (%p4533_p11), [#allocation10], 1024  }
 0x132   : > { %3459 = vsyncadd (%p4534_p8), [#allocation10], 4294966272  ;;  %s4535_s16 = sld [smem:[#allocation32_spill]]  ;;  %s592_s18 = sand.u32 1, %s3486_s22  }
 0x133   : > { %s2792_s30 = smul.u32 192, %s592_s18 }
 0x135   : > { %s4077_s17 = scalar_lea.vmem [#allocation11], %s2792_s30 }
 0x138   : > { %p4536_p1 = scmp.ne.s32.totalorder %s4535_s16, 0 }
 0x13a   : > { %3461 = dma.done.wait (%p4536_p1), %s565_s2, 3072  }
 0x13b   : > { %3463 = vsyncadd (%p4536_p1), %s565_s2, 4294964224  ;;  %s2473_s15 = sshll.u32 %s592_s18, 5 }
 0x13c   : > { %s4083_s5 = scalar_lea.vmem [#allocation12], %s2473_s15 }
 0x13d   : > { %3465 = dma.done.wait (%p4536_p1), %s574_s19, 512  }
 0x13e   : > { %3467 = vsyncadd (%p4536_p1), %s574_s19, 4294966784  ;;  %s2474_s14 = sshll.u32 %s592_s18, 6 }
 0x13f   : > { %s4089_s26 = scalar_lea.vmem [#allocation13], %s2474_s14 }
 0x140   : > { %3469 = dma.done.wait (%p4536_p1), %s565_s2, 1024  }
 0x141   : > { %3471 = vsyncadd (%p4536_p1), %s565_s2, 4294966272  ;;  %s4095_s21 = scalar_lea.vmem [#allocation14], %s2474_s14 }
 0x142   : > { %3473 = dma.done.wait (%p4536_p1), %s574_s19, 1024  }
 0x143   : > { %3475 = vsyncadd (%p4536_p1), %s574_s19, 4294966272  ;;  %s4537_s25 = sld [smem:[#allocation28_spill]]  ;;  %s4538_s10 = sld [smem:[#allocation46_spill]] }
 0x144   : > { %s4539_s16 = sld [smem:[#allocation48_spill]]  ;;  %s4540_s0 = sld [smem:[#allocation47_spill]] }
 0x145   : > { %s4541_s6 = sshll.u32 %s4050_s4, 4 }
 0x146   : > { %s4123_s7 = scalar_lea.vmem [#allocation15], %s4541_s6 }
 0x149   : > { %p700_p10 = scmp.lt.s32.totalorder %s4537_s25, 1  ;;  %p2478_p5 = scmp.ne.s32.totalorder %s4537_s25, 0 }
 0x14a   : > { %v2963_v0 = vld [vmem:[#allocation8] sm:$0xff] (!%p2478_p5)   ;;  %v3538_v1 = vmov (!%p2478_p5), 0.0   ;;  %v2964_v2 = vld [vmem:[#allocation8 + $0x8] sm:$0xff] (!%p2478_p5)   ;;  %vm3539_vm0 = vmmov (!%p2478_p5), 0   ;;  %v2965_v3 = vld [vmem:[#allocation8 + $0x10] sm:$0xff] (!%p2478_p5)  }
 0x14b   : > { %s4103_s12 = scalar_select %p700_p10, %s4537_s25, 1 }
 0x14c   : > { %716 = sbr.rel (%p2478_p5) target bundleno = 581 (0x245), region = 104  ;;  %2630 = vmatprep.subr.bf16.mxu0 (!%p2478_p5), %v3538_v1  ;;  %2646 = vmatprep.mubr.msk.bf16.mxu0 (!%p2478_p5), %vm3539_vm0, %v3538_v1  ;;  %v2966_v4 = vld [vmem:[#allocation8 + $0x18] sm:$0xff] (!%p2478_p5)   ;;  %v2967_v5 = vld [vmem:[#allocation8 + $0x20] sm:$0xff] (!%p2478_p5)   ;;  %v2968_v6 = vld [vmem:[#allocation8 + $0x28] sm:$0xff] (!%p2478_p5)  }
 0x14d   : > { %s2477_s27 = sshll.u32 %s4103_s12, 3  ;;  %s2793_s1 = smul.u32 3, %s4103_s12  ;;  %2631 = vmatpush3.bf16.msra.mxu0 (!%p2478_p5), %v2963_v0  ;;  %v2969_v7 = vld [vmem:[#allocation8 + $0x30] sm:$0xff] (!%p2478_p5)   ;;  %v2970_v8 = vld [vmem:[#allocation8 + $0x38] sm:$0xff] (!%p2478_p5)  }
 0x14e   : > { %s4110_s2 = scalar_lea.vmem %s4538_s10, %s2477_s27  ;;  %s710_s19 = scalar_lea.vmem %s4539_s16, %s4103_s12  ;;  %2632 = vmatprep.subr.bf16.mxu0 (!%p2478_p5), %v3538_v1  ;;  %v2971_v9 = vld [vmem:[%s4053_s9] sm:$0xff] (!%p2478_p5)   ;;  %v735_v10 = vld [vmem:[%s4062_s20] sm:$0xff] (!%p2478_p5) }
 0x14f   : > { %s4119_s3 = scalar_lea.vmem %s4540_s0, %s2793_s1  ;;  %v736_v12 = vld [vmem:[%s4062_s20 + $0x8] sm:$0xff] (!%p2478_p5) }
 0x151   : > { %2633 = vmatpush3.bf16.msra.mxu0 (!%p2478_p5), %v2964_v2 }
 0x152   : > { %2634 = vmatprep.subr.bf16.mxu0 (!%p2478_p5), %v3538_v1 }
 0x155   : > { %2635 = vmatpush3.bf16.msra.mxu0 %v2965_v3 }
 0x156   : > { %2636 = vmatprep.subr.bf16.mxu0 %v3538_v1 }
 0x159   : > { %2637 = vmatpush3.bf16.msra.mxu0 %v2966_v4 }
 0x15a   : > { %2638 = vmatprep.subr.bf16.mxu0 %v3538_v1 }
 0x15d   : > { %2639 = vmatpush3.bf16.msra.mxu0 %v2967_v5 }
 0x15e   : > { %2640 = vmatprep.subr.bf16.mxu0 %v3538_v1 }
 0x161   : > { %2641 = vmatpush3.bf16.msra.mxu0 %v2968_v6 }
 0x162   : > { %2642 = vmatprep.subr.bf16.mxu0 %v3538_v1 }
 0x165   : > { %2643 = vmatpush3.bf16.msra.mxu0 %v2969_v7 }
 0x166   : > { %2644 = vmatprep.subr.bf16.mxu0 %v3538_v1 }
 0x169   : > { %2645 = vmatpush3.bf16.msra.mxu0 %v2970_v8 }
 0x16c   : > { %2647 = vmatmul.mubr.bf16.vlgmr.msra.gmra.mrb[0].mxu0 %v2971_v9 }
 0x23f   : > { %v825_v11 = vpop.f32.mrb[0].mxu0 }
 0x240   : > { %v826_v13 = vadd.f32 %v825_v11, %v735_v10  ;;  %v2648_v14 = vpop.f32.mrb[1].mxu0 }
 0x241   : > { %v828_v15 = vpop.f32.mrb[2].mxu0 }
 0x242   : > { %832 = vst [vmem:[#allocation2] sm:$0xff] %v826_v13  ;;  %v829_v16 = vadd.f32 %v828_v15, %v736_v12  ;;  %v2649_v17 = vpop.f32.mrb[3].mxu0 }
 0x244   : > { %833 = vst [vmem:[#allocation2 + $0x8] sm:$0xff] %v829_v16 }
 0x245 PF: > { %v3540_v20 = vmov 0.0   ;;  %v3032_v21 = vld [vmem:[%s4077_s17 + $0x4] ss:$12 sps:$4 sm:$0xff]   ;;  %v3034_v22 = vld [vmem:[%s4077_s17] ss:$12 sps:$4 sm:$0xff]   ;;  %v834_v25 = vlaneseq  ;;  %v3541_v53 = vmov 0  }
 0x246   : > { %2650 = vmatprep.subr.bf16.mxu1 %v3540_v20  ;;  %v3035_v23 = vld [vmem:[%s4077_s17 + $0x8] ss:$12 sps:$4 sm:$0xff]   ;;  %1097 = vmatprep.subr.bf16.mxu0 %v3032_v21  ;;  %v3038_v38 = vld [vmem:[%s4077_s17 + $0x18] ss:$12 sps:$4 sm:$0xff]   ;;  %v3039_v39 = vld [vmem:[%s4077_s17 + $0x20] ss:$12 sps:$4 sm:$0xff]  }
 0x247   : > { %v3036_v24 = vld [vmem:[%s4077_s17 + $0x1c] ss:$12 sps:$4 sm:$0xff]   ;;  %2651 = vmatpush3.bf16.msra.mxu1 %v3035_v23  ;;  %1098 = vmatpush1.bf16.msra.mxu0 %v3034_v22  ;;  %v835_v26 = vand.u32 127, %v834_v25  ;;  %v3040_v40 = vld [vmem:[%s4077_s17 + $0x34] ss:$12 sps:$4 sm:$0xff]   ;;  %vm3542_vm2 = vmmov 0  }
 0x248   : > { %2652 = vmatprep.subr.bf16.mxu1 %v3540_v20  ;;  %1099 = vmatprep.subr.bf16.mxu0 %v3036_v24  ;;  %v3042_v41 = vld [vmem:[%s4077_s17 + $0x30] ss:$12 sps:$4 sm:$0xff]   ;;  %v3043_v42 = vld [vmem:[%s4077_s17 + $0x38] ss:$12 sps:$4 sm:$0xff]   ;;  %v3046_v44 = vld [vmem:[%s4077_s17 + $0x48] ss:$12 sps:$4 sm:$0xff]  }
 0x249   : > { %v4129_v18 = vld [vmem:[#allocation2] sm:$0xff]  ;;  %vm836_vm1 = vcmp.lt.s32.totalorder %v835_v26, 64  ;;  %v3044_v43 = vld [vmem:[%s4077_s17 + $0x4c] ss:$12 sps:$4 sm:$0xff]   ;;  %v3047_v45 = vld [vmem:[%s4077_s17 + $0x50] ss:$12 sps:$4 sm:$0xff]   ;;  %1129 = vmatprep.mubr.bf16.mxu0 %v3541_v53  ;;  %2666 = vmatprep.mubr.msk.bf16.mxu1 %vm3542_vm2, %v3540_v20 }
 0x24a   : > { %916 = vadd.xlane.f32.xlu0 %v4129_v18  ;;  %v4143_v29 = vsel %vm836_vm1, 1.0, %v3540_v20  ;;  %v3048_v46 = vld [vmem:[%s4077_s17 + $0x64] ss:$12 sps:$4 sm:$0xff]   ;;  %v3050_v47 = vld [vmem:[%s4077_s17 + $0x60] ss:$12 sps:$4 sm:$0xff]   ;;  %v4188_v1 = vshrl.u32 %v834_v25, 7 }
 0x24b   : > { %v4131_v19 = vld [vmem:[#allocation2 + $0x8] sm:$0xff]  ;;  %1100 = vmatpush1.bf16.msra.mxu0 %v3038_v38  ;;  %2653 = vmatpush3.bf16.msra.mxu1 %v3039_v39  ;;  %v3054_v50 = vld [vmem:[%s4077_s17 + $0x78] ss:$12 sps:$4 sm:$0xff]   ;;  %v3056_v52 = vld [vmem:[%s4077_s17 + $0x94] ss:$12 sps:$4 sm:$0xff]   ;;  %vm1253_vm3 = vcmask 130048  }
 0x24c   : > { %2654 = vmatprep.subr.bf16.mxu1 %v3540_v20  ;;  %1101 = vmatprep.subr.bf16.mxu0 %v3040_v40  ;;  %v3051_v48 = vld [vmem:[%s4077_s17 + $0x68] ss:$12 sps:$4 sm:$0xff]   ;;  %v3055_v51 = vld [vmem:[%s4077_s17 + $0x80] ss:$12 sps:$4 sm:$0xff]   ;;  %v3058_v54 = vld [vmem:[%s4077_s17 + $0x90] ss:$12 sps:$4 sm:$0xff]  }
 0x24d   : > { %v3052_v49 = vld [vmem:[%s4077_s17 + $0x7c] ss:$12 sps:$4 sm:$0xff]   ;;  %v3059_v55 = vld [vmem:[%s4077_s17 + $0x98] ss:$12 sps:$4 sm:$0xff]   ;;  %v942_v2 = vsub.s32 0, %v4188_v1  ;;  %v948_v7 = vsub.s32 1, %v4188_v1 }
 0x24e   : > { %918 = vadd.xlane.f32.xlu0 %v4131_v19  ;;  %v3060_v56 = vld [vmem:[%s4077_s17 + $0xac] ss:$12 sps:$4 sm:$0xff]   ;;  %v3062_v57 = vld [vmem:[%s4077_s17 + $0xa8] ss:$12 sps:$4 sm:$0xff]   ;;  %v3063_v58 = vld [vmem:[%s4077_s17 + $0xb0] ss:$12 sps:$4 sm:$0xff]  }
 0x24f   : > { %1102 = vmatpush1.bf16.msra.mxu0 %v3042_v41  ;;  %2655 = vmatpush3.bf16.msra.mxu1 %v3043_v42  ;;  %v4192_v3 = vld [vmem:[%s4110_s2] sm:$0xff]  ;;  %v964_v17 = vsub.s32 2, %v4188_v1  ;;  %s3544_s6 = smov 96   ;;  %s3545_s9 = smov 80   ;;  %vm1744_vm4 = vcmask 261120   ;;  %vm1747_vm5 = vcmask 392192  }
 0x250   : > { %2656 = vmatprep.subr.bf16.mxu1 %v3540_v20  ;;  %1103 = vmatprep.subr.bf16.mxu0 %v3044_v43  ;;  %v943_v6 = vrot.slane %v4192_v3, %v942_v2  ;;  %v949_v11 = vrot.slane %v4192_v3, %v948_v7  ;;  %v840_v16 = vld [vmem:[%s4119_s3] sm:$0x7]  ;;  %s3543_s3 = smov 112   ;;  %s3546_s0 = smov 16   ;;  %vm1779_vm6 = vcmask 523264  }
 0x251   : > { %v957_v21 = vrot.slane %v840_v16, %v942_v2  ;;  %v965_v23 = vrot.slane %v840_v16, %v964_v17  ;;  %v961_v25 = vrot.slane %v840_v16, %v948_v7  ;;  %s3547_s20 = smov 32   ;;  %s3548_s17 = smov 48  }
 0x253   : > { %1104 = vmatpush1.bf16.msra.mxu0 %v3046_v44  ;;  %2657 = vmatpush3.bf16.msra.mxu1 %v3047_v45 }
 0x254   : > { %2658 = vmatprep.subr.bf16.mxu1 %v3540_v20  ;;  %1105 = vmatprep.subr.bf16.mxu0 %v3048_v46 }
 0x257   : > { %1106 = vmatpush1.bf16.msra.mxu0 %v3050_v47  ;;  %2659 = vmatpush3.bf16.msra.mxu1 %v3051_v48 }
 0x258   : > { %1107 = vmatprep.subr.bf16.mxu0 %v3052_v49  ;;  %2660 = vmatprep.subr.bf16.mxu1 %v3540_v20 }
 0x25b   : > { %1108 = vmatpush1.bf16.msra.mxu0 %v3054_v50  ;;  %2661 = vmatpush3.bf16.msra.mxu1 %v3055_v51 }
 0x25c   : > { %1109 = vmatprep.subr.bf16.mxu0 %v3056_v52  ;;  %2662 = vmatprep.subr.bf16.mxu1 %v3540_v20 }
 0x25f   : > { %1110 = vmatpush1.bf16.msra.mxu0 %v3058_v54  ;;  %2663 = vmatpush3.bf16.msra.mxu1 %v3059_v55 }
 0x260   : > { %1111 = vmatprep.subr.bf16.mxu0 %v3060_v56  ;;  %2664 = vmatprep.subr.bf16.mxu1 %v3540_v20 }
 0x263   : > { %1112 = vmatpush1.bf16.msra.mxu0 %v3062_v57  ;;  %2665 = vmatpush3.bf16.msra.mxu1 %v3063_v58 }
 0x264   : > { %2670 = vmatprep.subr.bf16.mxu1 %v3540_v20  ;;  %2682 = vmatprep.subr.bf16.mxu0 %v3540_v20 }
 0x2d7   : > { %v917_v27 = vpop.xlane.xlu0 %916 }
 0x2d8   : > { %v920_v28 = vmul.f32 0.015625, %v917_v27 }
 0x2da   : > { %v922_v30 = vsub.f32 %v4129_v18, %v920_v28 }
 0x2db   : > { %v919_v31 = vpop.xlane.xlu0 %918 }
 0x2dc   : > { %v921_v32 = vmul.f32 0.015625, %v919_v31  ;;  %v4147_v33 = vmul.f32 %v4143_v29, %v922_v30 }
 0x2de   : > { %v923_v34 = vsub.f32 %v4131_v19, %v921_v32  ;;  %v926_v35 = vmul.f32 %v4147_v33, %v4147_v33 }
 0x2e0   : > { %928 = vadd.xlane.f32.xlu1 %v926_v35  ;;  %v4153_v36 = vmul.f32 %v4143_v29, %v923_v34 }
 0x2e2   : > { %v927_v37 = vmul.f32 %v4153_v36, %v4153_v36 }
 0x2e4   : > { %930 = vadd.xlane.f32.xlu1 %v927_v37 }
 0x36d   : > { %v929_v59 = vpop.xlane.xlu1 %928 }
 0x36e   : > { %v932_v60 = vmul.f32 0.015625, %v929_v59 }
 0x370   : > { %v934_v61 = vadd.f32 1e-05, %v932_v60 }
 0x371   : > { %v931_v62 = vpop.xlane.xlu1 %930 }
 0x372   : > { %3084 = vrsqrt.f32 %v934_v61  ;;  %v933_v63 = vmul.f32 0.015625, %v931_v62 }
 0x374   : > { %v935_v0 = vadd.f32 1e-05, %v933_v63 }
 0x376   : > { %3086 = vrsqrt.f32 %v935_v0 }
 0x37c   : > { %v3085_v4 = vpop.eup %3084 }
 0x37d   : > { %v938_v5 = vmul.f32 %v3085_v4, %v4147_v33 }
 0x37f   : > { %v944_v10 = vmul.f32 %v943_v6, %v938_v5 }
 0x380   : > { %v3087_v8 = vpop.eup %3086 }
 0x381   : > { %v939_v9 = vmul.f32 %v3087_v8, %v4153_v36  ;;  %v950_v13 = vadd.f32 %v949_v11, %v944_v10 }
 0x383   : > { %v945_v12 = vmul.f32 %v943_v6, %v939_v9 }
 0x385   : > { %v951_v14 = vadd.f32 %v949_v11, %v945_v12 }
 0x387   : > { %v952_v15 = vpack.c.bf16 %v951_v14, %v950_v13 }
 0x389   : > { %1130 = vmatmul.mubr.bf16.vlgmr.msra.gmra.mrb[0].mxu0 %v952_v15  ;;  %2667 = vmatmul.mubr.bf16.vlgmr.msra.gmra.mrb[0].mxu1 %v952_v15 }
 0x38a   : > { %2672 = vmatprep.mubr.msk.bf16.mxu1 %vm3542_vm2, %v3540_v20  ;;  %2684 = vmatprep.mubr.msk.bf16.mxu0 %vm3542_vm2, %v3540_v20 }
 0x45c   : > { %v1131_v22 = vpop.f32.mrb[0].mxu0  ;;  %v1174_v24 = vpop.f32.mrb[0].mxu1 }
 0x45d   : > { %v1132_v26 = vadd.f32 %v1131_v22, %v957_v21  ;;  %v1133_v27 = vpop.f32.mrb[1].mxu0  ;;  %v2668_v28 = vpop.f32.mrb[1].mxu1  ;;  %v1175_v36 = vadd.f32 %v1174_v24, %v965_v23 }
 0x45e   : > { %v1135_v30 = vpop.f32.mrb[2].mxu0  ;;  %v1177_v31 = vpop.f32.mrb[2].mxu1  ;;  %v1134_v37 = vadd.f32 %v1133_v27, %v961_v25 }
 0x45f   : > { %v1136_v32 = vadd.f32 %v1135_v30, %v957_v21  ;;  %v1178_v33 = vadd.f32 %v1177_v31, %v965_v23  ;;  %v1137_v34 = vpop.f32.mrb[3].mxu0  ;;  %v2669_v35 = vpop.f32.mrb[3].mxu1 }
 0x460   : > { %v1138_v38 = vadd.f32 %v1137_v34, %v961_v25 }
 0x461   : > { %v1201_v39 = vpack.c.bf16 %v1136_v32, %v1132_v26  ;;  %v2977_v40 = vpack.i.bf16 %v1136_v32, %v1132_v26  ;;  %v1249_v43 = vpack.c.bf16 %v1178_v33, %v1175_v36  ;;  %v4208_v44 = vpack.i.bf16 %v1178_v33, %v1175_v36 }
 0x462   : > { %v2972_v41 = vpack.i.bf16 %v1138_v38, %v1134_v37  ;;  %v1225_v42 = vpack.c.bf16 %v1138_v38, %v1134_v37 }
 0x463   : > { %2978 = vrot.lane.b32.xlu1 %v2977_v40, %s3543_s3 }
 0x464   : > { %2973 = vrot.lane.b32.xlu0 %v2972_v41, %s3543_s3  ;;  %v1258_v45 = vsel %vm1253_vm3, %v1225_v42, 0 }
 0x465   : > { %2671 = vmatpush3.bf16.xpose.msra.mxu1 %v1258_v45 }
 0x466   : > { %2676 = vmatprep.subr.bf16.mxu1 %v3540_v20 }
 0x467   : > { %2983 = vrot.lane.b32.xlu1 %v2972_v41, %s3544_s6 }
 0x468   : > { %2993 = vrot.lane.b32.xlu0 %v2977_v40, %s3544_s6 }
 0x46b   : > { %2988 = vrot.lane.b32.xlu1 %v2972_v41, %s3545_s9 }
 0x46c   : > { %2673 = vmatmul.mubr.msk.bf16.vlgmr.msra.gmra.mrb[4].mxu1 %vm1253_vm3, %v1201_v39 }
 0x46d   : > { %2678 = vmatprep.mubr.msk.bf16.mxu1 %vm3542_vm2, %v3540_v20 }
 0x46f   : > { %2998 = vrot.lane.b32.xlu1 %v2977_v40, %s3545_s9 }
 0x4d5   : > { %v2979_v46 = vpop.permute.xlu1 %2978 }
 0x4d6   : > { %v2974_v47 = vpop.permute.xlu0 %2973  ;;  %v2981_v56 = vunpack.i.h.bf16 %v2979_v46  ;;  %v2980_v57 = vunpack.i.l.bf16 %v2979_v46 }
 0x4d7   : > { %v2976_v48 = vunpack.i.h.bf16 %v2974_v47  ;;  %v2975_v49 = vunpack.i.l.bf16 %v2974_v47 }
 0x4d8   : > { %v1202_v4 = vpack.c.bf16 %v2981_v56, %v2980_v57 }
 0x4d9   : > { %v1226_v50 = vpack.c.bf16 %v2976_v48, %v2975_v49  ;;  %v2984_v51 = vpop.permute.xlu1 %2983 }
 0x4da   : > { %v2986_v52 = vunpack.i.h.bf16 %v2984_v51  ;;  %v2985_v53 = vunpack.i.l.bf16 %v2984_v51  ;;  %v2994_v58 = vpop.permute.xlu0 %2993 }
 0x4db   : > { %v1305_v54 = vsel %vm1253_vm3, %v1226_v50, 0  ;;  %v2996_v63 = vunpack.i.h.bf16 %v2994_v58  ;;  %v2995_v0 = vunpack.i.l.bf16 %v2994_v58 }
 0x4dc   : > { %v1227_v55 = vpack.c.bf16 %v2986_v52, %v2985_v53  ;;  %2677 = vmatpush3.bf16.xpose.msra.mxu1 %v1305_v54 }
 0x4dd   : > { %v2989_v59 = vpop.permute.xlu1 %2988  ;;  %2688 = vmatprep.subr.bf16.mxu1 %v3540_v20  ;;  %v1203_v7 = vpack.c.bf16 %v2996_v63, %v2995_v0 }
 0x4de   : > { %v2991_v60 = vunpack.i.h.bf16 %v2989_v59  ;;  %v2990_v61 = vunpack.i.l.bf16 %v2989_v59  ;;  %v1352_v62 = vsel %vm1253_vm3, %v1227_v55, 0 }
 0x4df   : > { %2683 = vmatpush3.bf16.xpose.msra.mxu0 %v1352_v62 }
 0x4e0   : > { %v1228_v2 = vpack.c.bf16 %v2991_v60, %v2990_v61  ;;  %2694 = vmatprep.subr.bf16.mxu0 %v3540_v20 }
 0x4e1   : > { %v2999_v5 = vpop.permute.xlu1 %2998 }
 0x4e2   : > { %v1399_v6 = vsel %vm1253_vm3, %v1228_v2, 0  ;;  %v3001_v8 = vunpack.i.h.bf16 %v2999_v5  ;;  %v3000_v9 = vunpack.i.l.bf16 %v2999_v5 }
 0x4e3   : > { %2679 = vmatmul.mubr.msk.bf16.vlgmr.msra.gmra.mrb[8].mxu1 %vm1253_vm3, %v1202_v4 }
 0x4e4   : > { %2689 = vmatpush3.bf16.xpose.msra.mxu1 %v1399_v6  ;;  %2690 = vmatprep.mubr.msk.bf16.mxu1 %vm3542_vm2, %v3540_v20  ;;  %v1204_v10 = vpack.c.bf16 %v3001_v8, %v3000_v9 }
 0x4e5   : > { %2700 = vmatprep.subr.bf16.mxu1 %v3540_v20 }
 0x4e6   : > { %2685 = vmatmul.mubr.msk.bf16.vlgmr.msra.gmra.mrb[4].mxu0 %vm1253_vm3, %v1203_v7 }
 0x4e7   : > { %2695 = vmatpush3.bf16.msra.mxu0 %v1249_v43  ;;  %2696 = vmatprep.mubr.msk.bf16.mxu0 %vm3542_vm2, %v3540_v20 }
 0x4e8   : > { %2706 = vmatprep.subr.bf16.mxu0 %v3540_v20 }
 0x4eb   : > { %2691 = vmatmul.mubr.msk.bf16.vlgmr.msra.gmra.mrb[12].mxu1 %vm1253_vm3, %v1204_v10 }
 0x4ec   : > { %2702 = vmatprep.mubr.msk.bf16.mxu1 %vm3542_vm2, %v3540_v20 }
 0x53f   : > { %v1294_v11 = vpop.f32.mrb[4].mxu1 }
 0x540   : > { %v1442_v12 = vmul.f32 0.25, %v1294_v11  ;;  %v2674_v13 = vpop.f32.mrb[5].mxu1 }
 0x541   : > { %v1297_v14 = vpop.f32.mrb[6].mxu1 }
 0x542   : > { %v1443_v15 = vmul.f32 0.25, %v1297_v14  ;;  %v2675_v16 = vpop.f32.mrb[7].mxu1  ;;  %v1450_v21 = vsel %vm1253_vm3, %v1442_v12, -inf }
 0x543   : > { %1451 = vmax.xlane.f32.xlu0 %v1450_v21 }
 0x544   : > { %v1453_v22 = vsel %vm1253_vm3, %v1443_v15, -inf }
 0x545   : > { %1454 = vmax.xlane.f32.xlu1 %v1453_v22 }
 0x5b6   : > { %v1341_v23 = vpop.f32.mrb[8].mxu1 }
 0x5b7   : > { %v1444_v24 = vmul.f32 0.25, %v1341_v23  ;;  %v2680_v25 = vpop.f32.mrb[9].mxu1 }
 0x5b8   : > { %v1344_v26 = vpop.f32.mrb[10].mxu1 }
 0x5b9   : > { %v1445_v27 = vmul.f32 0.25, %v1344_v26  ;;  %v2681_v28 = vpop.f32.mrb[11].mxu1  ;;  %v1388_v30 = vpop.f32.mrb[4].mxu0  ;;  %v1456_v31 = vsel %vm1253_vm3, %v1444_v24, -inf }
 0x5ba   : > { %v2686_v32 = vpop.f32.mrb[5].mxu0  ;;  %1457 = vmax.xlane.f32.xlu0 %v1456_v31  ;;  %v1446_v36 = vmul.f32 0.25, %v1388_v30 }
 0x5bb   : > { %v1391_v33 = vpop.f32.mrb[6].mxu0  ;;  %v1459_v37 = vsel %vm1253_vm3, %v1445_v27, -inf }
 0x5bc   : > { %v1447_v34 = vmul.f32 0.25, %v1391_v33  ;;  %v2687_v35 = vpop.f32.mrb[7].mxu0  ;;  %v1462_v46 = vsel %vm1253_vm3, %v1446_v36, -inf }
 0x5be   : > { %1460 = vmax.xlane.f32.xlu0 %v1459_v37  ;;  %v1435_v38 = vpop.f32.mrb[12].mxu1  ;;  %v1465_v39 = vsel %vm1253_vm3, %v1447_v34, -inf }
 0x5bf   : > { %1466 = vmax.xlane.f32.xlu1 %v1465_v39  ;;  %v2692_v40 = vpop.f32.mrb[13].mxu1  ;;  %v1448_v42 = vmul.f32 0.25, %v1435_v38 }
 0x5c0   : > { %v1438_v41 = vpop.f32.mrb[14].mxu1 }
 0x5c1   : > { %v4241_v43 = vmul.f32 0.25, %v1438_v41  ;;  %v2693_v45 = vpop.f32.mrb[15].mxu1  ;;  %v1468_v48 = vsel %vm1253_vm3, %v1448_v42, -inf }
 0x5c2   : > { %1463 = vmax.xlane.f32.xlu0 %v1462_v46 }
 0x5c3   : > { %v1471_v47 = vsel %vm1253_vm3, %v4241_v43, -inf }
 0x5c4   : > { %1472 = vmax.xlane.f32.xlu1 %v1471_v47 }
 0x5c6   : > { %1469 = vmax.xlane.f32.xlu0 %v1468_v48 }
 0x5d0   : > { %v1452_v49 = vpop.xlane.xlu0 %1451 }
 0x5d1   : > { %v1474_v50 = vsub.f32 %v1442_v12, %v1452_v49 }
 0x5d2   : > { %v1455_v51 = vpop.xlane.xlu1 %1454 }
 0x5d3   : > { %v1482_v52 = vmul.f32 1.442695, %v1474_v50  ;;  %v1475_v53 = vsub.f32 %v1443_v15, %v1455_v51 }
 0x5d5   : > { %3088 = vpow2.f32 %v1482_v52  ;;  %v1484_v54 = vmul.f32 1.442695, %v1475_v53 }
 0x5d7   : > { %3090 = vpow2.f32 %v1484_v54 }
 0x5df   : > { %v3089_v55 = vpop.eup %3088 }
 0x5e0   : > { %v1498_v56 = vsel %vm1253_vm3, %v3089_v55, 0.0 }
 0x5e1   : > { %v3091_v57 = vpop.eup %3090  ;;  %1499 = vadd.xlane.f32.xlu0 %v1498_v56 }
 0x5e2   : > { %v1501_v58 = vsel %vm1253_vm3, %v3091_v57, 0.0 }
 0x5e3   : > { %1502 = vadd.xlane.f32.xlu1 %v1501_v58 }
 0x647   : > { %v1458_v59 = vpop.xlane.xlu0 %1457 }
 0x648   : > { %v1476_v60 = vsub.f32 %v1444_v24, %v1458_v59 }
 0x64a   : > { %v1486_v61 = vmul.f32 1.442695, %v1476_v60 }
 0x64b   : > { %v1461_v62 = vpop.xlane.xlu0 %1460 }
 0x64c   : > { %3092 = vpow2.f32 %v1486_v61  ;;  %v1477_v63 = vsub.f32 %v1445_v27, %v1461_v62  ;;  %v1467_v0 = vpop.xlane.xlu1 %1466 }
 0x64d   : > { %v1479_v2 = vsub.f32 %v1447_v34, %v1467_v0 }
 0x64e   : > { %v1488_v4 = vmul.f32 1.442695, %v1477_v63 }
 0x64f   : > { %v1492_v5 = vmul.f32 1.442695, %v1479_v2  ;;  %v1464_v6 = vpop.xlane.xlu0 %1463 }
 0x650   : > { %3094 = vpow2.f32 %v1488_v4  ;;  %v1478_v7 = vsub.f32 %v1446_v36, %v1464_v6 }
 0x651   : > { %3096 = vpow2.f32 %v1492_v5  ;;  %v1473_v26 = vpop.xlane.xlu1 %1472 }
 0x652   : > { %v1490_v8 = vmul.f32 1.442695, %v1478_v7  ;;  %v1481_v35 = vsub.f32 %v4241_v43, %v1473_v26 }
 0x653   : > { %v1470_v9 = vpop.xlane.xlu0 %1469 }
 0x654   : > { %3098 = vpow2.f32 %v1490_v8  ;;  %v1480_v10 = vsub.f32 %v1448_v42, %v1470_v9  ;;  %v1496_v36 = vmul.f32 1.442695, %v1481_v35 }
 0x656   : > { %v3093_v11 = vpop.eup %3092  ;;  %v1494_v12 = vmul.f32 1.442695, %v1480_v10 }
 0x657   : > { %v1504_v13 = vsel %vm1253_vm3, %v3093_v11, 0.0 }
 0x658   : > { %3100 = vpow2.f32 %v1494_v12  ;;  %1505 = vadd.xlane.f32.xlu0 %v1504_v13 }
 0x65a   : > { %v3095_v14 = vpop.eup %3094 }
 0x65b   : > { %v1507_v15 = vsel %vm1253_vm3, %v3095_v14, 0.0  ;;  %v3097_v16 = vpop.eup %3096 }
 0x65c   : > { %1508 = vadd.xlane.f32.xlu1 %v1507_v15  ;;  %v1513_v23 = vsel %vm1253_vm3, %v3097_v16, 0.0  ;;  %v3065_v15 = vld [vmem:[%s4083_s5 + $0x8] sm:$0xff]  }
 0x65e   : > { %v3099_v21 = vpop.eup %3098 }
 0x65f   : > { %v1510_v22 = vsel %vm1253_vm3, %v3099_v21, 0.0 }
 0x660   : > { %1511 = vadd.xlane.f32.xlu0 %v1510_v22  ;;  %1514 = vadd.xlane.f32.xlu1 %v1513_v23 }
 0x662   : > { %v4253_v24 = vpop.eup %3100 }
 0x663   : > { %v1516_v25 = vsel %vm1253_vm3, %v4253_v24, 0.0 }
 0x664   : > { %1517 = vadd.xlane.f32.xlu0 %v1516_v25 }
 0x66e   : > { %v1500_v27 = vpop.xlane.xlu0 %1499 }
 0x66f   : > { %3102 = vrcp.f32 %v1500_v27 }
 0x670   : > { %v1503_v28 = vpop.xlane.xlu1 %1502 }
 0x671   : > { %3104 = vrcp.f32 %v1503_v28  ;;  %3008 = vrot.lane.b32.xlu1 %v4208_v44, %s3544_s6 }
 0x672   : > { %3106 = vpow2.f32 %v1496_v36 }
 0x679   : > { %v3103_v30 = vpop.eup %3102 }
 0x67a   : > { %3003 = vrot.lane.b32.xlu0 %v4208_v44, %s3543_s3  ;;  %v1530_v32 = vmul.f32 %v3103_v30, %v3089_v55 }
 0x67b   : > { %v3105_v31 = vpop.eup %3104 }
 0x67c   : > { %v1531_v33 = vmul.f32 %v3105_v31, %v3091_v57  ;;  %v3107_v37 = vpop.eup %3106 }
 0x67d   : > { %v1519_v38 = vsel %vm1253_vm3, %v3107_v37, 0.0 }
 0x67e   : > { %v1538_v34 = vpack.c.bf16 %v1531_v33, %v1530_v32  ;;  %v3067_v32 = vld [vmem:[%s4083_s5 + $0x18] sm:$0xff]  }
 0x680   : > { %2697 = vmatmul.mubr.msk.bf16.vlgmr.msra.gmra.mrb[8].mxu0 %vm1253_vm3, %v1538_v34 }
 0x681   : > { %2708 = vmatprep.mubr.msk.bf16.mxu0 %vm3542_vm2, %v3540_v20 }
 0x695   : > { %1520 = vadd.xlane.f32.xlu1 %v1519_v38 }
 0x6a6   : > { %3013 = vrot.lane.b32.xlu1 %v4208_v44, %s3545_s9 }
 0x6e5   : > { %v1506_v39 = vpop.xlane.xlu0 %1505 }
 0x6e9   : > { %v1509_v40 = vpop.xlane.xlu1 %1508 }
 0x6ea   : > { %3108 = vrcp.f32 %v1509_v40 }
 0x6eb   : > { %3110 = vrcp.f32 %v1506_v39 }
 0x6ed   : > { %v1512_v41 = vpop.xlane.xlu0 %1511  ;;  %v1515_v42 = vpop.xlane.xlu1 %1514 }
 0x6ee   : > { %3112 = vrcp.f32 %v1512_v41 }
 0x6ef   : > { %3114 = vrcp.f32 %v1515_v42 }
 0x6f1   : > { %v1518_v43 = vpop.xlane.xlu0 %1517  ;;  %v3009_v45 = vpop.permute.xlu1 %3008 }
 0x6f2   : > { %v3011_v46 = vunpack.i.h.bf16 %v3009_v45  ;;  %v3010_v47 = vunpack.i.l.bf16 %v3009_v45  ;;  %3116 = vrcp.f32 %v1518_v43 }
 0x6f4   : > { %v3109_v48 = vpop.eup %3108  ;;  %v1251_v49 = vpack.c.bf16 %v3011_v46, %v3010_v47 }
 0x6f5   : > { %v3004_v50 = vpop.permute.xlu0 %3003  ;;  %v3111_v51 = vpop.eup %3110  ;;  %v1533_v44 = vmul.f32 %v3109_v48, %v3095_v14  ;;  %v3064_v14 = vld [vmem:[%s4083_s5] sm:$0xff]  }
 0x6f6   : > { %v3006_v52 = vunpack.i.h.bf16 %v3004_v50  ;;  %v3005_v53 = vunpack.i.l.bf16 %v3004_v50  ;;  %2707 = vmatpush3.bf16.msra.mxu0 %v1251_v49  ;;  %v1532_v57 = vmul.f32 %v3111_v51, %v3093_v11 }
 0x6f7   : > { %2718 = vmatprep.subr.bf16.mxu0 %v3540_v20 }
 0x6f8   : > { %v3113_v54 = vpop.eup %3112  ;;  %v1250_v55 = vpack.c.bf16 %v3006_v52, %v3005_v53  ;;  %v1539_v60 = vpack.c.bf16 %v1533_v44, %v1532_v57 }
 0x6f9   : > { %v3115_v56 = vpop.eup %3114  ;;  %v1534_v58 = vmul.f32 %v3113_v54, %v3099_v21  ;;  %v3066_v21 = vld [vmem:[%s4083_s5 + $0x10] sm:$0xff]   ;;  %v1754_v54 = vrot.slane %v4192_v3, %v964_v17 }
 0x6fa   : > { %v1535_v59 = vmul.f32 %v3115_v56, %v3097_v16  ;;  %2701 = vmatpush3.bf16.msra.mxu1 %v1250_v55 }
 0x6fb   : > { %2712 = vmatprep.subr.bf16.mxu1 %v3540_v20 }
 0x6fc   : > { %v1540_v61 = vpack.c.bf16 %v1535_v59, %v1534_v58  ;;  %v3117_v5 = vpop.eup %3116 }
 0x6fd   : > { %2703 = vmatmul.mubr.msk.bf16.vlgmr.msra.gmra.mrb[16].mxu1 %vm1253_vm3, %v1539_v60  ;;  %v1536_v7 = vmul.f32 %v3117_v5, %v4253_v24 }
 0x6fe   : > { %2709 = vmatmul.mubr.msk.bf16.vlgmr.msra.gmra.mrb[12].mxu0 %vm1253_vm3, %v1540_v61  ;;  %2714 = vmatprep.mubr.msk.bf16.mxu1 %vm3542_vm2, %v3540_v20 }
 0x6ff   : > { %2726 = vmatprep.mubr.msk.bf16.mxu0 %vm3542_vm2, %v3540_v20  ;;  %2719 = vmatpush3.bf16.msra.mxu0 %v3064_v14  ;;  %v3075_v14 = vld [vmem:[%s4089_s26 + $0x38] sm:$0xff]  }
 0x700   : > { %2720 = vmatprep.subr.bf16.mxu0 %v3540_v20 }
 0x703   : > { %2721 = vmatpush3.bf16.msra.mxu0 %v3065_v15 }
 0x704   : > { %2722 = vmatprep.subr.bf16.mxu0 %v3540_v20 }
 0x707   : > { %2723 = vmatpush3.bf16.msra.mxu0 %v3066_v21 }
 0x708   : > { %2724 = vmatprep.subr.bf16.mxu0 %v3540_v20 }
 0x70b   : > { %2725 = vmatpush3.bf16.msra.mxu0 %v3067_v32 }
 0x70c   : > { %2750 = vmatprep.subr.bf16.mxu0 %v3540_v20 }
 0x722   : > { %v1521_v62 = vpop.xlane.xlu1 %1520 }
 0x723   : > { %3118 = vrcp.f32 %v1521_v62 }
 0x726   : > { %v3014_v63 = vpop.permute.xlu1 %3013 }
 0x727   : > { %v3016_v0 = vunpack.i.h.bf16 %v3014_v63  ;;  %v3015_v2 = vunpack.i.l.bf16 %v3014_v63  ;;  %v3068_v63 = vld [vmem:[%s4089_s26] sm:$0xff]  }
 0x729   : > { %v1252_v4 = vpack.c.bf16 %v3016_v0, %v3015_v2 }
 0x72b   : > { %2713 = vmatpush3.bf16.msra.mxu1 %v1252_v4 }
 0x72c   : > { %2730 = vmatprep.subr.bf16.mxu1 %v3540_v20 }
 0x72d   : > { %v3119_v6 = vpop.eup %3118 }
 0x72e   : > { %v1537_v8 = vmul.f32 %v3119_v6, %v3107_v37 }
 0x730   : > { %v1541_v9 = vpack.c.bf16 %v1537_v8, %v1536_v7 }
 0x732   : > { %2715 = vmatmul.mubr.msk.bf16.vlgmr.msra.gmra.mrb[20].mxu1 %vm1253_vm3, %v1541_v9  ;;  %v3069_v9 = vld [vmem:[%s4089_s26 + $0x8] sm:$0xff]  }
 0x733   : > { %2746 = vmatprep.mubr.msk.bf16.mxu1 %vm3542_vm2, %v3540_v20  ;;  %2731 = vmatpush3.bf16.msra.mxu1 %v3068_v63 }
 0x734   : > { %2732 = vmatprep.subr.bf16.mxu1 %v3540_v20 }
 0x737   : > { %2733 = vmatpush3.bf16.msra.mxu1 %v3069_v9  ;;  %v1979_v9 = vsub.s32 5, %v4188_v1 }
 0x738   : > { %2734 = vmatprep.subr.bf16.mxu1 %v3540_v20 }
 0x753   : > { %v1579_v10 = vpop.f32.mrb[8].mxu0 }
 0x754   : > { %v2698_v11 = vpop.f32.mrb[9].mxu0 }
 0x755   : > { %v1582_v12 = vpop.f32.mrb[10].mxu0  ;;  %v3071_v11 = vld [vmem:[%s4089_s26 + $0x18] sm:$0xff]  }
 0x756   : > { %v2699_v13 = vpop.f32.mrb[11].mxu0 }
 0x757   : > { %v3074_v13 = vld [vmem:[%s4089_s26 + $0x30] sm:$0xff]  }
 0x7d0   : > { %v1623_v16 = vpop.f32.mrb[16].mxu1 }
 0x7d1   : > { %v1667_v22 = vpop.f32.mrb[12].mxu0  ;;  %v2704_v23 = vpop.f32.mrb[17].mxu1 }
 0x7d2   : > { %v2710_v24 = vpop.f32.mrb[13].mxu0  ;;  %v1626_v25 = vpop.f32.mrb[18].mxu1 }
 0x7d3   : > { %v3017_v26 = vpack.i.bf16 %v1626_v25, %v1623_v16  ;;  %v1670_v27 = vpop.f32.mrb[14].mxu0  ;;  %v2705_v28 = vpop.f32.mrb[19].mxu1  ;;  %v1852_v25 = vsub.s32 3, %v4188_v1 }
 0x7d4   : > { %v3022_v30 = vpack.i.bf16 %v1670_v27, %v1667_v22  ;;  %v2711_v31 = vpop.f32.mrb[15].mxu0 }
 0x7d5   : > { %3018 = vrot.lane.b32.xlu1 %v3017_v26, %s3546_s0  ;;  %v1853_v28 = vrot.slane %v4192_v3, %v1852_v25 }
 0x7d6   : > { %3023 = vrot.lane.b32.xlu0 %v3022_v30, %s3547_s20  ;;  %v1858_v30 = vsub.s32 4, %v4188_v1 }
 0x805   : > { %v1711_v33 = vpop.f32.mrb[20].mxu1 }
 0x806   : > { %v2716_v34 = vpop.f32.mrb[21].mxu1 }
 0x807   : > { %v1714_v35 = vpop.f32.mrb[22].mxu1  ;;  %v1859_v34 = vrot.slane %v4192_v3, %v1858_v30 }
 0x808   : > { %v3027_v36 = vpack.i.bf16 %v1714_v35, %v1711_v33  ;;  %v2717_v37 = vpop.f32.mrb[23].mxu1 }
 0x80a   : > { %3028 = vrot.lane.b32.xlu1 %v3027_v36, %s3548_s17 }
 0x847   : > { %v3019_v38 = vpop.permute.xlu1 %3018 }
 0x848   : > { %v3024_v39 = vpop.permute.xlu0 %3023  ;;  %v3021_v40 = vunpack.i.h.bf16 %v3019_v38  ;;  %v3020_v41 = vunpack.i.l.bf16 %v3019_v38 }
 0x849   : > { %v3026_v42 = vunpack.i.h.bf16 %v3024_v39  ;;  %v3025_v43 = vunpack.i.l.bf16 %v3024_v39  ;;  %v3076_v39 = vld [vmem:[%s4095_s21] sm:$0xff]  }
 0x84a   : > { %v1743_v45 = vsel %vm1253_vm3, %v1582_v12, %v3021_v40  ;;  %v1742_v46 = vsel %vm1253_vm3, %v1579_v10, %v3020_v41  ;;  %v3070_v10 = vld [vmem:[%s4089_s26 + $0x10] sm:$0xff]   ;;  %v3072_v12 = vld [vmem:[%s4089_s26 + $0x20] sm:$0xff]   ;;  %v3077_v40 = vld [vmem:[%s4095_s21 + $0x8] sm:$0xff]  }
 0x84b   : > { %v1745_v50 = vsel %vm1744_vm4, %v1742_v46, %v3025_v43  ;;  %v1746_v51 = vsel %vm1744_vm4, %v1743_v45, %v3026_v42  ;;  %2735 = vmatpush3.bf16.msra.mxu1 %v3070_v10  ;;  %v3078_v41 = vld [vmem:[%s4095_s21 + $0x10] sm:$0xff]   ;;  %v3079_v42 = vld [vmem:[%s4095_s21 + $0x18] sm:$0xff]   ;;  %v3080_v43 = vld [vmem:[%s4095_s21 + $0x20] sm:$0xff]   ;;  %v1980_v10 = vrot.slane %v4192_v3, %v1979_v9 }
 0x84c   : > { %2736 = vmatprep.subr.bf16.mxu1 %v3540_v20  ;;  %v3081_v45 = vld [vmem:[%s4095_s21 + $0x28] sm:$0xff]   ;;  %v3082_v46 = vld [vmem:[%s4095_s21 + $0x30] sm:$0xff]  }
 0x84f   : > { %2737 = vmatpush3.bf16.msra.mxu1 %v3071_v11 }
 0x850   : > { %2738 = vmatprep.subr.bf16.mxu1 %v3540_v20 }
 0x853   : > { %2739 = vmatpush3.bf16.msra.mxu1 %v3072_v12 }
 0x854   : > { %2740 = vmatprep.subr.bf16.mxu1 %v3540_v20 }
 0x87c   : > { %v3029_v47 = vpop.permute.xlu1 %3028 }
 0x87d   : > { %v3031_v48 = vunpack.i.h.bf16 %v3029_v47  ;;  %v3030_v49 = vunpack.i.l.bf16 %v3029_v47  ;;  %v3083_v47 = vld [vmem:[%s4095_s21 + $0x38] sm:$0xff]   ;;  %s4543_s21 = sld [smem:[#allocation28_spill]] }
 0x87f   : > { %v1749_v52 = vsel %vm1747_vm5, %v1746_v51, %v3031_v48  ;;  %v1748_v53 = vsel %vm1747_vm5, %v1745_v50, %v3030_v49  ;;  %v2526_v48 = vld [vmem:[%s710_s19] ss:$0 sm:$0xff] }
 0x880   : > { %v1750_v44 = vpack.c.bf16 %v1749_v52, %v1748_v53 }
 0x882   : > { %2727 = vmatmul.mubr.msk.bf16.vlgmr.msra.gmra.mrb[16].mxu0 %vm1779_vm6, %v1750_v44 }
 0x883   : > { %2766 = vmatprep.mubr.msk.bf16.mxu0 %vm3542_vm2, %v3540_v20  ;;  %2751 = vmatpush3.bf16.msra.mxu0 %v3076_v39  ;;  %p2543_p6 = scmp.ne.s32.totalorder %s4543_s21, 1 }
 0x884   : > { %2752 = vmatprep.subr.bf16.mxu0 %v3540_v20  ;;  %v3129_v1 = vld [vmem:[#allocation9 + $0x8] sm:$0xff] (!%p2543_p6)   ;;  %vm3550_vm7 = vmmov (!%p2543_p6), 0   ;;  %v3130_v3 = vld [vmem:[#allocation9 + $0x10] sm:$0xff] (!%p2543_p6)   ;;  %s4544_s1 = sld [smem:[#allocation42_spill]] (!%p2543_p6) }
 0x885   : > { %v3134_v25 = vld [vmem:[#allocation9 + $0x30] sm:$0xff] (!%p2543_p6)  }
 0x887   : > { %2753 = vmatpush3.bf16.msra.mxu0 %v3077_v40 }
 0x888   : > { %2754 = vmatprep.subr.bf16.mxu0 %v3540_v20 }
 0x88b   : > { %2755 = vmatpush3.bf16.msra.mxu0 %v3078_v41 }
 0x88c   : > { %2756 = vmatprep.subr.bf16.mxu0 %v3540_v20 }
 0x88f   : > { %2757 = vmatpush3.bf16.msra.mxu0 %v3079_v42 }
 0x890   : > { %2758 = vmatprep.subr.bf16.mxu0 %v3540_v20 }
 0x893   : > { %2759 = vmatpush3.bf16.msra.mxu0 %v3080_v43 }
 0x894   : > { %2760 = vmatprep.subr.bf16.mxu0 %v3540_v20 }
 0x897   : > { %2761 = vmatpush3.bf16.msra.mxu0 %v3081_v45 }
 0x898   : > { %2762 = vmatprep.subr.bf16.mxu0 %v3540_v20 }
 0x89b   : > { %2763 = vmatpush3.bf16.msra.mxu0 %v3082_v46 }
 0x89c   : > { %2764 = vmatprep.subr.bf16.mxu0 %v3540_v20 }
 0x89f   : > { %2765 = vmatpush3.bf16.msra.mxu0 %v3083_v47 }
 0x955   : > { %v1817_v55 = vpop.f32.mrb[16].mxu0 }
 0x956   : > { %v1818_v56 = vadd.f32 %v1817_v55, %v1754_v54  ;;  %v2728_v57 = vpop.f32.mrb[17].mxu0 }
 0x957   : > { %v1820_v58 = vpop.f32.mrb[18].mxu0 }
 0x958   : > { %v4297_v59 = vadd.f32 %v1818_v56, %v4129_v18  ;;  %v1821_v60 = vadd.f32 %v1820_v58, %v1754_v54  ;;  %v2729_v61 = vpop.f32.mrb[19].mxu0 }
 0x95a   : > { %v4300_v62 = vadd.f32 %v1821_v60, %v4131_v19  ;;  %1826 = vadd.xlane.f32.xlu0 %v4297_v59 }
 0x95c   : > { %1828 = vadd.xlane.f32.xlu1 %v4300_v62 }
 0x9e7   : > { %v1827_v17 = vpop.xlane.xlu0 %1826 }
 0x9e8   : > { %v1830_v0 = vmul.f32 0.015625, %v1827_v17 }
 0x9e9   : > { %v1829_v2 = vpop.xlane.xlu1 %1828 }
 0x9ea   : > { %v1832_v18 = vsub.f32 %v4297_v59, %v1830_v0  ;;  %v1831_v4 = vmul.f32 0.015625, %v1829_v2 }
 0x9ec   : > { %v1833_v19 = vsub.f32 %v4300_v62, %v1831_v4  ;;  %v1834_v5 = vmul.f32 %v4143_v29, %v1832_v18 }
 0x9ee   : > { %v1836_v6 = vmul.f32 %v1834_v5, %v1834_v5  ;;  %v1835_v7 = vmul.f32 %v4143_v29, %v1833_v19  ;;  %v3073_v29 = vld [vmem:[%s4089_s26 + $0x28] sm:$0xff]  }
 0x9ef   : > { %2741 = vmatpush3.bf16.msra.mxu1 %v3073_v29 }
 0x9f0   : > { %1838 = vadd.xlane.f32.xlu0 %v1836_v6  ;;  %v1837_v8 = vmul.f32 %v1835_v7, %v1835_v7  ;;  %2742 = vmatprep.subr.bf16.mxu1 %v3540_v20 }
 0x9f3   : > { %2743 = vmatpush3.bf16.msra.mxu1 %v3074_v13 }
 0x9f4   : > { %1840 = vadd.xlane.f32.xlu0 %v1837_v8  ;;  %2744 = vmatprep.subr.bf16.mxu1 %v3540_v20 }
 0x9f7   : > { %2745 = vmatpush3.bf16.msra.mxu1 %v3075_v14 }
 0xa7d   : > { %v1839_v15 = vpop.xlane.xlu0 %1838 }
 0xa7e   : > { %v1842_v16 = vmul.f32 0.015625, %v1839_v15 }
 0xa80   : > { %v1844_v21 = vadd.f32 1e-05, %v1842_v16 }
 0xa81   : > { %v1841_v22 = vpop.xlane.xlu0 %1840 }
 0xa82   : > { %3120 = vrsqrt.f32 %v1844_v21  ;;  %v1843_v23 = vmul.f32 0.015625, %v1841_v22  ;;  %v3128_v22 = vld [vmem:[#allocation9] sm:$0xff] (!%p2543_p6)  }
 0xa84   : > { %v1845_v24 = vadd.f32 1e-05, %v1843_v23  ;;  %v3549_v23 = vmov (!%p2543_p6), 0.0  }
 0xa85   : > { %2770 = vmatprep.subr.bf16.mxu0 (!%p2543_p6), %v3549_v23 }
 0xa86   : > { %3122 = vrsqrt.f32 %v1845_v24  ;;  %v3133_v24 = vld [vmem:[#allocation9 + $0x28] sm:$0xff] (!%p2543_p6)  }
 0xa8c   : > { %v3121_v26 = vpop.eup %3120 }
 0xa8d   : > { %v1848_v27 = vmul.f32 %v3121_v26, %v1834_v5  ;;  %v3135_v26 = vld [vmem:[#allocation9 + $0x38] sm:$0xff] (!%p2543_p6)  }
 0xa8f   : > { %v1854_v33 = vmul.f32 %v1853_v28, %v1848_v27 }
 0xa90   : > { %v3123_v31 = vpop.eup %3122 }
 0xa91   : > { %v1849_v32 = vmul.f32 %v3123_v31, %v1835_v7  ;;  %v1860_v36 = vadd.f32 %v1859_v34, %v1854_v33 }
 0xa93   : > { %v1855_v35 = vmul.f32 %v1853_v28, %v1849_v32  ;;  %v2544_v28 = vld [vmem:[%s4544_s1] ss:$0 sm:$0xff] (!%p2543_p6) }
 0xa95   : > { %v1861_v37 = vadd.f32 %v1859_v34, %v1855_v35 }
 0xa97   : > { %v1862_v38 = vpack.c.bf16 %v1861_v37, %v1860_v36 }
 0xa99   : > { %2747 = vmatmul.mubr.bf16.vlgmr.msra.gmra.mrb[24].mxu1 %v1862_v38 }
 0xb6c   : > { %v1951_v49 = vpop.f32.mrb[24].mxu1 }
 0xb6d   : > { %v1952_v50 = vadd.f32 %v2526_v48, %v1951_v49  ;;  %v2748_v51 = vpop.f32.mrb[25].mxu1 }
 0xb6e   : > { %v1954_v52 = vpop.f32.mrb[26].mxu1 }
 0xb6f   : > { %v1960_v53 = vmul.f32 0.044715, %v1952_v50  ;;  %v1955_v44 = vadd.f32 %v2526_v48, %v1954_v52  ;;  %v2749_v54 = vpop.f32.mrb[27].mxu1  ;;  %v1958_v4 = vmul.f32 0.5, %v1952_v50 }
 0xb71   : > { %v1962_v55 = vmul.f32 %v1960_v53, %v1952_v50  ;;  %v1961_v56 = vmul.f32 0.044715, %v1955_v44  ;;  %v1959_v19 = vmul.f32 0.5, %v1955_v44 }
 0xb73   : > { %v1964_v57 = vmul.f32 %v1962_v55, %v1952_v50  ;;  %v1963_v58 = vmul.f32 %v1961_v56, %v1955_v44 }
 0xb75   : > { %v1966_v60 = vadd.f32 %v1964_v57, %v1952_v50  ;;  %v1965_v61 = vmul.f32 %v1963_v58, %v1955_v44 }
 0xb77   : > { %v1968_v20 = vmul.f32 0.7978846, %v1966_v60  ;;  %v1967_v63 = vadd.f32 %v1965_v61, %v1955_v44 }
 0xb79   : > { %3124 = vtanh.f32 %v1968_v20  ;;  %v1969_v17 = vmul.f32 0.7978846, %v1967_v63 }
 0xb7b   : > { %3126 = vtanh.f32 %v1969_v17 }
 0xb83   : > { %v3125_v0 = vpop.eup %3124 }
 0xb84   : > { %v1972_v2 = vadd.f32 1.0, %v3125_v0 }
 0xb85   : > { %v3127_v18 = vpop.eup %3126 }
 0xb86   : > { %v1973_v5 = vadd.f32 1.0, %v3127_v18  ;;  %v1974_v6 = vmul.f32 %v1972_v2, %v1958_v4 }
 0xb88   : > { %v1975_v7 = vmul.f32 %v1973_v5, %v1959_v19 }
 0xb8a   : > { %v1976_v8 = vpack.c.bf16 %v1975_v7, %v1974_v6 }
 0xb8c   : > { %2767 = vmatmul.mubr.bf16.vlgmr.msra.gmra.mrb[20].mxu0 %v1976_v8 }
 0xb8d   : > { %2771 = vmatpush3.bf16.msra.mxu0 (!%p2543_p6), %v3128_v22  ;;  %2786 = vmatprep.mubr.msk.bf16.mxu0 (!%p2543_p6), %vm3550_vm7, %v3549_v23 }
 0xb8e   : > { %2772 = vmatprep.subr.bf16.mxu0 (!%p2543_p6), %v3549_v23 }
 0xb91   : > { %2773 = vmatpush3.bf16.msra.mxu0 (!%p2543_p6), %v3129_v1 }
 0xb92   : > { %2774 = vmatprep.subr.bf16.mxu0 (!%p2543_p6), %v3549_v23 }
 0xb95   : > { %2775 = vmatpush3.bf16.msra.mxu0 (!%p2543_p6), %v3130_v3 }
 0xb96   : > { %2776 = vmatprep.subr.bf16.mxu0 (!%p2543_p6), %v3549_v23 }
 0xc5f   : > { %v2063_v11 = vpop.f32.mrb[20].mxu0 }
 0xc60   : > { %v2064_v12 = vadd.f32 %v2063_v11, %v1980_v10  ;;  %v2768_v29 = vpop.f32.mrb[21].mxu0  ;;  %2077 = sbr.rel (%p2543_p6) target bundleno = 3407 (0xd4f), region = 108 }
 0xc61   : > { %v2066_v13 = vpop.f32.mrb[22].mxu0 }
 0xc62   : > { %v2070_v14 = vadd.f32 %v2064_v12, %v4297_v59  ;;  %v2067_v15 = vadd.f32 %v2066_v13, %v1980_v10  ;;  %v2769_v16 = vpop.f32.mrb[23].mxu0  ;;  %v3131_v59 = vld [vmem:[#allocation9 + $0x18] sm:$0xff] (!%p2543_p6)  }
 0xc63   : > { %2777 = vmatpush3.bf16.msra.mxu0 (!%p2543_p6), %v3131_v59 }
 0xc64   : > { %2072 = vst [vmem:[#allocation2] sm:$0xff] %v2070_v14  ;;  %v2071_v21 = vadd.f32 %v2067_v15, %v4300_v62  ;;  %v3132_v62 = vld [vmem:[#allocation9 + $0x20] sm:$0xff] (!%p2543_p6)   ;;  %2778 = vmatprep.subr.bf16.mxu0 (!%p2543_p6), %v3549_v23 }
 0xc66   : > { %2073 = vst [vmem:[#allocation2 + $0x8] sm:$0xff] %v2071_v21  ;;  %v2078_v27 = vpack.c.bf16 (!%p2543_p6), %v2071_v21, %v2070_v14 }
 0xc67   : > { %2779 = vmatpush3.bf16.msra.mxu0 %v3132_v62 }
 0xc68   : > { %2780 = vmatprep.subr.bf16.mxu0 %v3549_v23 }
 0xc6b   : > { %2781 = vmatpush3.bf16.msra.mxu0 %v3133_v24 }
 0xc6c   : > { %2782 = vmatprep.subr.bf16.mxu0 %v3549_v23 }
 0xc6f   : > { %2783 = vmatpush3.bf16.msra.mxu0 %v3134_v25 }
 0xc70   : > { %2784 = vmatprep.subr.bf16.mxu0 %v3549_v23 }
 0xc73   : > { %2785 = vmatpush3.bf16.msra.mxu0 %v3135_v26 }
 0xc76   : > { %2787 = vmatmul.mubr.bf16.vlgmr.msra.gmra.mrb[0].mxu0 %v2078_v27 }
 0xd49   : > { %v2184_v30 = vpop.f32.mrb[0].mxu0 }
 0xd4a   : > { %v2185_v31 = vadd.f32 %v2544_v28, %v2184_v30  ;;  %v2788_v32 = vpop.f32.mrb[1].mxu0 }
 0xd4b   : > { %v2187_v33 = vpop.f32.mrb[2].mxu0 }
 0xd4c   : > { %2191 = vst [vmem:[%s4123_s7] sm:$0xff] %v2185_v31  ;;  %v2188_v34 = vadd.f32 %v2544_v28, %v2187_v33  ;;  %v2789_v35 = vpop.f32.mrb[3].mxu0 }
 0xd4e   : > { %2192 = vst [vmem:[%s4123_s7 + $0x8] sm:$0xff] %v2188_v34 }
 0xd4f PF: > { %s4545_s11 = sld [smem:[#allocation29_spill]]  ;;  %s4546_s28 = sld [smem:[#allocation35_spill]] }
 0xd50   : > { %s4547_s30 = sld [smem:[#allocation49_spill]]  ;;  %s2207_s15 = sshll.u32 %s4123_s7, 4  ;;  %s4364_s15 = int_to_ptr.vmem [resolvable:$true] %s2207_s15 }
 0xd51   : > { %s2194_s14 = scalar_lea.sflag [#allocation5], %s4050_s4  ;;  %s3372_s3 = scalar_lea.vmem %s4364_s15, 256 }
 0xd52   : > { %p3373_p7 = scmp.ne.s32.totalorder %s4364_s15, %s3372_s3  ;;  %s3551_s6 = smov [#allocation15]  }
 0xd53   : > { %s3376_s9 = sshll.u32 %s3551_s6, 4  ;;  %s3377_s9 = int_to_ptr.vmem [resolvable:$false] %s3376_s9 }
 0xd54   : > { %s3378_s0 = scalar_lea.vmem %s3377_s9, 512  ;;  %p3379_p2 = scmp.lt.s32.totalorder %s4364_s15, %s3377_s9 }
 0xd55   : > { %s2563_s10 = sshll.u32 %s4545_s11, 8  ;;  %p4549_p0 = scmp.ne.s32.totalorder %s4546_s28, 0 }
 0xd56   : > { %s4548_s16 = smov %s4547_s30  ;;  %s4361_s19 = scalar_lea.hbm %s4547_s30, %s2563_s10 }
 0xd57   : > { %p3374_p3 = pnand %p3373_p7, %p4549_p0  ;;  %p3380_p13 = scmp.lt.s32.totalorder %s3378_s0, %s3372_s3 }
 0xd59   : > { %p3375_p12 = pneg %p3374_p3  ;;  %p3381_p9 = por %p3380_p13, %p3379_p2 }
 0xd5b   : > { %p3382_p4 = pnand %p3381_p9, %p3375_p12 }
 0xd5d   : > { %3385 = shalt.err (!%p3382_p4)
}
 0xd5e   : > { %s3386_s7 = scalar_lea.hbm %s4361_s19, 256  ;;  %s3390_s5 = scalar_lea.hbm %s4548_s16, 512 }
 0xd5f   : > { %p3387_p11 = scmp.ne.s32.totalorder %s4361_s19, %s3386_s7  ;;  %p3391_p10 = scmp.lt.u32.totalorder %s4361_s19, %s4548_s16 }
 0xd60   : > { %p3392_p5 = scmp.lt.u32.totalorder %s3390_s5, %s3386_s7  ;;  %p3394_p7 = scmp.lt.u32.totalorder %s3386_s7, %s4361_s19 }
 0xd61   : > { %p3388_p8 = pnand %p3387_p11, %p4549_p0 }
 0xd62   : > { %p3393_p6 = por %p3392_p5, %p3391_p10 }
 0xd63   : > { %p3389_p1 = pneg %p3388_p8 }
 0xd64   : > { %p3395_p3 = por %p3394_p7, %p3393_p6 }
 0xd66   : > { %p3396_p12 = pnand %p3395_p3, %p3389_p1 }
 0xd68   : > { %3399 = shalt.err (!%p3396_p12)
}
 0xd69   : > { %s3552_s21 = smov 128   ;;  %s3553_s12 = smov 8  }
 0xd6a   : > { %2814 = dma.vmem_to_hbm [thread:$0]  (%p4549_p0), %s4364_s15, 256, %s4361_s19, %s2194_s14, %s3552_s21, %s3552_s21, %s3553_s12  }
 0xd6b PF: > { %s4550_s27 = sld [smem:[#allocation25_spill]]  ;;  %s4551_s1 = sld [smem:[#allocation33_spill]] }
 0xd6c   : > { %p2851_p2 = scmp.ge.s32.totalorder %s3522_s13, 2 }
 0xd71   : > { %s2222_s11 = sand.u32 1, %s4550_s27   ;;  %p4552_p13 = scmp.ne.s32.totalorder %s4551_s1, 0 }
 0xd72   : > { %s2223_s10 = scalar_lea.sflag [#allocation5], %s2222_s11 }
 0xd73   : > { %p2843_p9 = pnand %p2851_p2, %p4552_p13 }
 0xd75   : > { %3477 = dma.done.wait (!%p2843_p9), %s2223_s10, 256  }
 0xd76   : > { %3479 = vsyncadd (!%p2843_p9), %s2223_s10, 4294967040  ;;  %s32_s13 = sadd.s32 1, %s3522_s13   ;;  %s4553_s28 = sld [smem:[#allocation26_spill]] }
 0xd77   : > { %p29_p4 = scmp.ge.s32.totalorder %s32_s13, 6   ;;  %s4554_s25 = sld [smem:[#allocation27_spill]] }
 0xd78   : > { %s4555_s26 = sld [smem:[#allocation37_spill]]  ;;  %s4556_s4 = sld [smem:[#allocation30_spill]] }
 0xd79   : > { %s4557_s2 = sld [smem:[#allocation34_spill]]  ;;  %s4558_s30 = sld [smem:[#allocation36_spill]] }
 0xd7a   : > { %s4559_s21 = smov %s3486_s22  ;;  %s4560_s22 = smov %s3490_s23 }
 0xd7b   : > { %s4561_s23 = smov %s3866_s24  ;;  %s4563_s27 = smov %s3514_s29 }
 0xd7c   : > { %s4562_s24 = smov %s4553_s28  ;;  %31 = sbr.rel (!%p29_p4) target bundleno = 25 (0x19), region = 195 }
 0xd7e   : > { %s4564_s28 = smov %s4556_s4 }
 0xd7f   : > { %s4565_s29 = smov %s4557_s2 }
 0xd83   :  { %2228 = vsyncpa [#allocation4], 1 }
 0xd84   :  { %2230 = vsyncpa [#allocation4 + $0x1], 1 }
 0xd85   :  { %2231 = vsyncpa [#allocation7], 1 }
 0xd86   :  { %2233 = vsyncpa [#allocation7 + $0x1], 1 }
 0xd87   :  { %2234 = vsyncpa [#allocation10], 1 }
 0xd88   :  { %2235 = vsyncpa [#allocation5], 1 }
 0xd89   :  { %2237 = vsyncpa [#allocation5 + $0x1], 1 }

</bundles_post_ra>
